<compile_context>
chip_gen: v7x
topology: tpu7x:2x2x1
jax: 0.10.0
libtpu: 0.0.40
codegen_flags: <defaults>
</compile_context>

<pallas_src>
import functools

import jax
import jax.numpy as jnp
from jax.experimental import pallas as pl
from jax.experimental.pallas import tpu as pltpu

_VMEM = pl.BlockSpec(memory_space=pltpu.MemorySpace.VMEM)


def _vmem_limit_bytes():
    """Generation-aware scoped-VMEM budget (large on 128-MiB parts, capped on v7x)."""
    try:
        cap = pltpu.get_tpu_info().vmem_capacity_bytes
    except Exception:
        return 48 * 1024 * 1024
    return int(min(max(cap - 24 * 1024 * 1024, 32 * 1024 * 1024), 100 * 1024 * 1024))


_VMEM_LIMIT = _vmem_limit_bytes()


def _pick_tile(dim, candidates):
    """Largest candidate tile that evenly divides `dim`, else the full dim.

    TODO(synk): for dims that are not multiples of 128 the fallback uses the
    full dimension as a single tile; pad/mask would be needed for huge odd dims.
    """
    for c in candidates:
        if dim >= c and dim % c == 0:
            return c
    return dim


def _apply_act(y, act):
    if act == "gelu":
        # TODO(synk): HF default is exact erf-GELU; tanh approximation used here
        # (numerically very close, EUP-friendly).
        return 0.5 * y * (1.0 + jnp.tanh(0.7978845608028654 * (y + 0.044715 * y * y * y)))
    if act == "tanh":
        return jnp.tanh(y)
    return y


# ----------------------------- Pallas kernels -----------------------------

def _dense_kernel(x_ref, w_ref, b_ref, o_ref, *, act):
    """Weight-stationary matmul (tk = K) with bias + activation epilogue."""
    y = jnp.dot(x_ref[...], w_ref[...], preferred_element_type=jnp.float32)
    y = y + b_ref[...].astype(jnp.float32)
    y = _apply_act(y, act)
    o_ref[...] = y.astype(o_ref.dtype)


def _dense_ln_kernel(x_ref, w_ref, b_ref, res_ref, g_ref, bt_ref, o_ref, *, act, eps):
    """Weight-stationary matmul with fused residual-add + LayerNorm epilogue."""
    y = jnp.dot(x_ref[...], w_ref[...], preferred_element_type=jnp.float32)
    y = y + b_ref[...].astype(jnp.float32)
    y = _apply_act(y, act)
    y = y + res_ref[...].astype(jnp.float32)
    mu = jnp.mean(y, axis=-1, keepdims=True)
    yc = y - mu
    var = jnp.mean(yc * yc, axis=-1, keepdims=True)
    y = yc * jax.lax.rsqrt(var + eps)
    y = y * g_ref[...].astype(jnp.float32) + bt_ref[...].astype(jnp.float32)
    o_ref[...] = y.astype(o_ref.dtype)


def _emb_ln_kernel(wrd_ref, pos_ref, typ_ref, g_ref, b_ref, o_ref, *, eps):
    """Fused embedding sum (word + position + token-type) + LayerNorm."""
    x = (wrd_ref[0].astype(jnp.float32)
         + pos_ref[0].astype(jnp.float32)
         + typ_ref[0].astype(jnp.float32))
    mu = jnp.mean(x, axis=-1, keepdims=True)
    xc = x - mu
    var = jnp.mean(xc * xc, axis=-1, keepdims=True)
    y = xc * jax.lax.rsqrt(var + eps)
    y = y * g_ref[...].astype(jnp.float32) + b_ref[...].astype(jnp.float32)
    o_ref[0] = y.astype(o_ref.dtype)


def _attention_kernel(kv_ref, bias_ref, o_ref, *, nheads, dh, hidden, tq):
    """Multi-head attention on a resident [S, 3H] QKV slab.

    Heads are sliced at static column offsets (no host transposes); the full
    K/V sequence is in VMEM so an exact row softmax is used.  The 1/sqrt(dH)
    scale is already folded into the Q projection weights.
    """
    qi = pl.program_id(1)
    row0 = pl.multiple_of(qi * tq, tq)
    bias = bias_ref[0].astype(jnp.float32)                       # (1, S)

    ctx = []
    for h in range(nheads):
        q = kv_ref[0, pl.ds(row0, tq), h * dh:(h + 1) * dh]                      # (tq, dh)
        k = kv_ref[0, :, hidden + h * dh:hidden + (h + 1) * dh]                  # (S, dh)
        v = kv_ref[0, :, 2 * hidden + h * dh:2 * hidden + (h + 1) * dh]          # (S, dh)

        s = jax.lax.dot_general(q, k, (((1,), (1,)), ((), ())),
                                preferred_element_type=jnp.float32)              # (tq, S)
        s = s + bias
        m = jnp.max(s, axis=-1, keepdims=True)
        p = jnp.exp(s - m)
        l = jnp.sum(p, axis=-1, keepdims=True)
        c = jnp.dot(p.astype(jnp.bfloat16), v, preferred_element_type=jnp.float32)
        ctx.append(c / l)

    # single lane-dense H-wide store
    o_ref[0] = jnp.concatenate(ctx, axis=-1).astype(o_ref.dtype)


def _head_kernel(x_ref, pw_ref, pb_ref, cw_ref, cb_ref, oh_ref, logits_ref, loss_ref):
    """Fused pooler (tanh) + classifier + mean cross-entropy loss (bf16 MXU path)."""
    x = x_ref[...].astype(jnp.bfloat16)
    pooled = jnp.tanh(jnp.dot(x, pw_ref[...].astype(jnp.bfloat16),
                              preferred_element_type=jnp.float32)
                      + pb_ref[...].astype(jnp.float32))
    logits = jnp.dot(pooled.astype(jnp.bfloat16), cw_ref[...].astype(jnp.bfloat16),
                     preferred_element_type=jnp.float32) + cb_ref[...].astype(jnp.float32)
    logits_ref[...] = logits.astype(logits_ref.dtype)

    m = jnp.max(logits, axis=-1, keepdims=True)
    lse = m + jnp.log(jnp.sum(jnp.exp(logits - m), axis=-1, keepdims=True))
    nll = lse - jnp.sum(logits * oh_ref[...].astype(jnp.float32), axis=-1, keepdims=True)
    loss_ref[...] = jnp.mean(nll, axis=0, keepdims=True)


# --------------------------- pallas_call wrappers ---------------------------

def dense(x, w, b, *, act="none", out_dtype=jnp.bfloat16):
    """y = act(x @ w + b).  Weight-stationary: grid (N/tn, M/tm), tk = K."""
    M, K = x.shape
    N = w.shape[1]
    tm = _pick_tile(M, (512, 256, 128))
    tn = _pick_tile(N, (1024, 768, 512, 384, 256, 128))
    grid = (N // tn, M // tm)

    return pl.pallas_call(
        functools.partial(_dense_kernel, act=act),
        out_shape=jax.ShapeDtypeStruct((M, N), out_dtype),
        grid_spec=pltpu.PrefetchScalarGridSpec(
            num_scalar_prefetch=0,
            grid=grid,
            in_specs=[
                pl.BlockSpec((tm, K), lambda j, i: (i, 0)),   # activations stream
                pl.BlockSpec((K, tn), lambda j, i: (0, j)),   # weight: resident across i
                pl.BlockSpec((1, tn), lambda j, i: (0, j)),
            ],
            out_specs=pl.BlockSpec((tm, tn), lambda j, i: (i, j))),
        compiler_params=pltpu.CompilerParams(
            dimension_semantics=("parallel", "parallel"),
            vmem_limit_bytes=_VMEM_LIMIT),
    )(x, w, b.reshape(1, N))


def dense_ln(x, w, b, res, gamma, beta, *, act="none", out_dtype=jnp.bfloat16, eps=1e-12):
    """LayerNorm(act(x @ w + b) + res).  Weight read exactly once (tn = N, tk = K)."""
    M, K = x.shape
    N = w.shape[1]
    tm = _pick_tile(M, (512, 256, 128))

    return pl.pallas_call(
        functools.partial(_dense_ln_kernel, act=act, eps=eps),
        out_shape=jax.ShapeDtypeStruct((M, N), out_dtype),
        grid_spec=pltpu.PrefetchScalarGridSpec(
            num_scalar_prefetch=0,
            grid=(M // tm,),
            in_specs=[
                pl.BlockSpec((tm, K), lambda i: (i, 0)),
                pl.BlockSpec((K, N), lambda i: (0, 0)),       # full weight, resident
                pl.BlockSpec((1, N), lambda i: (0, 0)),
                pl.BlockSpec((tm, N), lambda i: (i, 0)),      # residual
                pl.BlockSpec((1, N), lambda i: (0, 0)),       # gamma
                pl.BlockSpec((1, N), lambda i: (0, 0)),       # beta
            ],
            out_specs=pl.BlockSpec((tm, N), lambda i: (i, 0))),
        compiler_params=pltpu.CompilerParams(
            dimension_semantics=("parallel",),
            vmem_limit_bytes=_VMEM_LIMIT),
    )(x, w, b.reshape(1, N), res, gamma.reshape(1, N), beta.reshape(1, N))


def emb_layernorm(wrd, pos, typ, gamma, beta, *, out_dtype=jnp.bfloat16, eps=1e-12):
    """LayerNorm(word + pos + type) fused in one kernel."""
    B, S, H = wrd.shape
    ts = _pick_tile(S, (512, 256, 128))

    return pl.pallas_call(
        functools.partial(_emb_ln_kernel, eps=eps),
        out_shape=jax.ShapeDtypeStruct((B, S, H), out_dtype),
        grid_spec=pltpu.PrefetchScalarGridSpec(
            num_scalar_prefetch=0,
            grid=(B, S // ts),
            in_specs=[
                pl.BlockSpec((1, ts, H), lambda b, si: (b, si, 0)),
                pl.BlockSpec((1, ts, H), lambda b, si: (0, si, 0)),
                pl.BlockSpec((1, 1, H), lambda b, si: (0, 0, 0)),
                pl.BlockSpec((1, H), lambda b, si: (0, 0)),
                pl.BlockSpec((1, H), lambda b, si: (0, 0)),
            ],
            out_specs=pl.BlockSpec((1, ts, H), lambda b, si: (b, si, 0))),
        compiler_params=pltpu.CompilerParams(
            dimension_semantics=("parallel", "parallel"),
            vmem_limit_bytes=_VMEM_LIMIT),
    )(wrd, pos, typ, gamma.reshape(1, H), beta.reshape(1, H))


def attention(qkv, bias, *, nheads, hidden):
    """qkv: [B, S, 3H] (bf16, scale folded into Q); bias: [B, 1, S] additive mask.

    Returns context in [B, S, H] layout directly (no host transposes)."""
    B, S, threeH = qkv.shape
    dh = hidden // nheads
    tq = _pick_tile(S, (512, 256, 128))

    return pl.pallas_call(
        functools.partial(_attention_kernel, nheads=nheads, dh=dh, hidden=hidden, tq=tq),
        out_shape=jax.ShapeDtypeStruct((B, S, hidden), qkv.dtype),
        grid_spec=pltpu.PrefetchScalarGridSpec(
            num_scalar_prefetch=0,
            grid=(B, S // tq),
            in_specs=[
                pl.BlockSpec((1, S, threeH), lambda b, qi: (b, 0, 0)),  # resident per batch
                pl.BlockSpec((1, 1, S), lambda b, qi: (b, 0, 0)),
            ],
            out_specs=pl.BlockSpec((1, tq, hidden), lambda b, qi: (b, qi, 0))),
        compiler_params=pltpu.CompilerParams(
            dimension_semantics=("parallel", "parallel"),
            vmem_limit_bytes=_VMEM_LIMIT),
    )(qkv, bias)


def head(x_cls, pool_w, pool_b, cls_w, cls_b, onehot):
    B, H = x_cls.shape
    C = cls_w.shape[1]
    logits, loss = pl.pallas_call(
        _head_kernel,
        out_shape=(jax.ShapeDtypeStruct((B, C), jnp.float32),
                   jax.ShapeDtypeStruct((1, 1), jnp.float32)),
        in_specs=[_VMEM] * 6,
        out_specs=(_VMEM, _VMEM),
    )(x_cls, pool_w, pool_b.reshape(1, H), cls_w, cls_b.reshape(1, C), onehot)
    return logits, loss[0, 0]


# ------------------------------- parameters -------------------------------

def init_params(key, cfg):
    H, I, V, P, C = cfg["hidden"], cfg["inter"], cfg["vocab"], cfg["max_pos"], cfg["labels"]
    dH = H // cfg["heads"]
    att_scale = 1.0 / float(dH) ** 0.5

    def nrm(k, shape, dtype=jnp.float32):
        return (0.02 * jax.random.normal(k, shape, jnp.float32)).astype(dtype)

    keys = iter(jax.random.split(key, 8 + 8 * cfg["layers"]))
    params = {
        # embedding tables kept in bf16 (halves gather/HBM traffic)
        "word_emb": nrm(next(keys), (V, H), jnp.bfloat16),
        "pos_emb": nrm(next(keys), (P, H), jnp.bfloat16),
        "type_emb": nrm(next(keys), (2, H), jnp.bfloat16),
        "emb_ln_g": jnp.ones((H,), jnp.float32),
        "emb_ln_b": jnp.zeros((H,), jnp.float32),
        "pool_w": nrm(next(keys), (H, H)),
        "pool_b": jnp.zeros((H,), jnp.float32),
        "cls_w": nrm(next(keys), (H, C)),
        "cls_b": jnp.zeros((C,), jnp.float32),
        "layers": [],
    }
    for _ in range(cfg["layers"]):
        # fused Q|K|V projection weight; 1/sqrt(dH) folded into the Q columns
        wqkv = 0.02 * jax.random.normal(next(keys), (H, 3 * H), jnp.float32)
        wqkv = wqkv.at[:, :H].multiply(att_scale)
        params["layers"].append({
            "wqkv": wqkv.astype(jnp.bfloat16),
            "bqkv": jnp.zeros((3 * H,), jnp.float32),  # zero, so scale-fold is a no-op here
            "wo": nrm(next(keys), (H, H), jnp.bfloat16),
            "bo": jnp.zeros((H,), jnp.float32),
            "ln1_g": jnp.ones((H,), jnp.float32),
            "ln1_b": jnp.zeros((H,), jnp.float32),
            "wi": nrm(next(keys), (H, I), jnp.bfloat16),
            "bi": jnp.zeros((I,), jnp.float32),
            "wf": nrm(next(keys), (I, H), jnp.bfloat16),
            "bf": jnp.zeros((H,), jnp.float32),
            "ln2_g": jnp.ones((H,), jnp.float32),
            "ln2_b": jnp.zeros((H,), jnp.float32),
        })
    return params


# -------------------------------- forward --------------------------------

def bert_forward(params, input_ids, attention_mask, labels, cfg):
    B, S = input_ids.shape
    H, nH, C = cfg["hidden"], cfg["heads"], cfg["labels"]
    M = B * S

    # Embeddings: gather is plain-JAX glue; sum + LayerNorm fused in one kernel
    wrd = jnp.take(params["word_emb"], input_ids, axis=0)          # (B, S, H) bf16
    pos = params["pos_emb"][:S].reshape(1, S, H)
    typ = params["type_emb"][0].reshape(1, 1, H)                   # token_type_ids == 0
    x = emb_layernorm(wrd, pos, typ, params["emb_ln_g"], params["emb_ln_b"])
    x2d = x.reshape(M, H)

    # additive attention-mask bias, compact as [B, 1, S]; broadcast in-kernel
    bias = ((1.0 - attention_mask.astype(jnp.float32)) * -1e9).reshape(B, 1, S)

    for lyr in params["layers"]:
        # fused QKV projection: one [M, 3H] matmul (scale already folded into Q)
        qkv = dense(x2d, lyr["wqkv"], lyr["bqkv"]).reshape(B, S, 3 * H)

        # multi-head attention straight on the [B, S, 3H] slab -> [B, S, H]
        ctx = attention(qkv, bias, nheads=nH, hidden=H).reshape(M, H)

        # attention output projection fused with residual-add + LayerNorm1
        x2d = dense_ln(ctx, lyr["wo"], lyr["bo"], x2d, lyr["ln1_g"], lyr["ln1_b"])

        # FFN up-projection with fused bias + GELU epilogue
        inter = dense(x2d, lyr["wi"], lyr["bi"], act="gelu")

        # FFN down-projection fused with residual-add + LayerNorm2
        x2d = dense_ln(inter, lyr["wf"], lyr["bf"], x2d, lyr["ln2_g"], lyr["ln2_b"])

    # fused pooler (tanh) + classifier + cross-entropy head
    cls_tok = x2d.reshape(B, S, H)[:, 0, :]
    onehot = jax.nn.one_hot(labels, C, dtype=jnp.float32)
    logits, loss = head(cls_tok, params["pool_w"], params["pool_b"],
                        params["cls_w"], params["cls_b"], onehot)

    # TODO(synk): BertTokenizer text encoding + json tactic-group lookup have
    # no Pallas equivalent; kernel consumes token ids / mask / labels directly.
    return logits, loss


# --------------------------------- main ----------------------------------

if __name__ == "__main__":
    cfg = dict(vocab=64, hidden=32, heads=2, layers=2, inter=128,
               max_pos=16, labels=10, seq=8, batch=2)

    key = jax.random.PRNGKey(0)
    k_param, k_ids, k_lbl = jax.random.split(key, 3)

    params = init_params(k_param, cfg)

    B, S = cfg["batch"], cfg["seq"]
    input_ids = jax.random.randint(k_ids, (B, S), 1, cfg["vocab"], dtype=jnp.int32)
    lengths = jnp.array([S, 5], dtype=jnp.int32)                 # simulated padding
    attention_mask = (jnp.arange(S)[None, :] < lengths[:, None]).astype(jnp.int32)
    input_ids = input_ids * attention_mask                       # pad token id = 0
    labels = jax.random.randint(k_lbl, (B,), 0, cfg["labels"], dtype=jnp.int32)

    logits, loss = jax.jit(
        functools.partial(bert_forward, cfg=cfg)
    )(params, input_ids, attention_mask, labels)
    jax.block_until_ready((logits, loss))

    assert logits.shape == (B, cfg["labels"])
    assert loss.shape == ()
    assert bool(jnp.isfinite(loss))
    print("KERNEL_OK")
</pallas_src>

<mosaic_0001>
module attributes {stable_mosaic.version = 11 : i64} {
  func.func @_emb_ln_kernel(%arg0: i32, %arg1: i32, %arg2: memref<1x8x32xbf16, #tpu.memory_space<vmem>>, %arg3: memref<1x8x32xbf16, #tpu.memory_space<vmem>>, %arg4: memref<1x1x32xbf16, #tpu.memory_space<vmem>>, %arg5: memref<1x32xf32, #tpu.memory_space<vmem>>, %arg6: memref<1x32xf32, #tpu.memory_space<vmem>>, %arg7: memref<1x8x32xbf16, #tpu.memory_space<vmem>>) attributes {dimension_semantics = [#tpu.dimension_semantics<parallel>, #tpu.dimension_semantics<parallel>], iteration_bounds = array<i64: 2, 1>, scalar_prefetch = 0 : i64, scratch_operands = 0 : i64, tpu.core_type = #tpu.core_type<tc>, window_params = [{transform_indices = @transform_0, window_bounds = array<i64: 1, 8, 32>}, {transform_indices = @transform_1, window_bounds = array<i64: 1, 8, 32>}, {pipeline_mode = #tpu.pipeline_mode<synchronous>, transform_indices = @transform_2, window_bounds = array<i64: 1, 1, 32>}, {pipeline_mode = #tpu.pipeline_mode<synchronous>, transform_indices = @transform_3, window_bounds = array<i64: 1, 32>}, {pipeline_mode = #tpu.pipeline_mode<synchronous>, transform_indices = @transform_4, window_bounds = array<i64: 1, 32>}, {transform_indices = @transform_5, window_bounds = array<i64: 1, 8, 32>}]} {
    %c0 = arith.constant 0 : index
    %c0_0 = arith.constant 0 : index
    %c0_1 = arith.constant 0 : index
    %0 = vector.load %arg2[%c0, %c0_0, %c0_1] : memref<1x8x32xbf16, #tpu.memory_space<vmem>>, vector<1x8x32xbf16>
    %1 = vector.shape_cast %0 : vector<1x8x32xbf16> to vector<8x32xbf16>
    %2 = arith.extf %1 : vector<8x32xbf16> to vector<8x32xf32>
    %c0_2 = arith.constant 0 : index
    %c0_3 = arith.constant 0 : index
    %c0_4 = arith.constant 0 : index
    %3 = vector.load %arg3[%c0_2, %c0_3, %c0_4] : memref<1x8x32xbf16, #tpu.memory_space<vmem>>, vector<1x8x32xbf16>
    %4 = vector.shape_cast %3 : vector<1x8x32xbf16> to vector<8x32xbf16>
    %5 = arith.extf %4 : vector<8x32xbf16> to vector<8x32xf32>
    %6 = arith.addf %2, %5 : vector<8x32xf32>
    %c0_5 = arith.constant 0 : index
    %c0_6 = arith.constant 0 : index
    %c0_7 = arith.constant 0 : index
    %7 = vector.load %arg4[%c0_5, %c0_6, %c0_7] : memref<1x1x32xbf16, #tpu.memory_space<vmem>>, vector<1x1x32xbf16>
    %8 = vector.shape_cast %7 : vector<1x1x32xbf16> to vector<1x32xbf16>
    %9 = arith.extf %8 : vector<1x32xbf16> to vector<1x32xf32>
    %10 = vector.broadcast %9 : vector<1x32xf32> to vector<8x32xf32>
    %11 = arith.addf %6, %10 : vector<8x32xf32>
    %cst = arith.constant dense<0.000000e+00> : vector<8xf32>
    %12 = vector.multi_reduction <add>, %11, %cst [1] : vector<8x32xf32> to vector<8xf32>
    %13 = vector.shape_cast %12 : vector<8xf32> to vector<8x1xf32>
    %cst_8 = arith.constant 3.200000e+01 : f32
    %14 = vector.broadcast %cst_8 : f32 to vector<8x1xf32>
    %15 = arith.divf %13, %14 : vector<8x1xf32>
    %16 = vector.broadcast %15 : vector<8x1xf32> to vector<8x32xf32>
    %17 = arith.subf %11, %16 : vector<8x32xf32>
    %18 = arith.mulf %17, %17 : vector<8x32xf32>
    %cst_9 = arith.constant dense<0.000000e+00> : vector<8xf32>
    %19 = vector.multi_reduction <add>, %18, %cst_9 [1] : vector<8x32xf32> to vector<8xf32>
    %20 = vector.shape_cast %19 : vector<8xf32> to vector<8x1xf32>
    %cst_10 = arith.constant 3.200000e+01 : f32
    %21 = vector.broadcast %cst_10 : f32 to vector<8x1xf32>
    %22 = arith.divf %20, %21 : vector<8x1xf32>
    %cst_11 = arith.constant 9.99999996E-13 : f32
    %23 = vector.broadcast %cst_11 : f32 to vector<8x1xf32>
    %24 = arith.addf %22, %23 : vector<8x1xf32>
    %25 = math.rsqrt %24 : vector<8x1xf32>
    %26 = vector.broadcast %25 : vector<8x1xf32> to vector<8x32xf32>
    %27 = arith.mulf %17, %26 : vector<8x32xf32>
    %c0_12 = arith.constant 0 : index
    %c0_13 = arith.constant 0 : index
    %28 = vector.load %arg5[%c0_12, %c0_13] : memref<1x32xf32, #tpu.memory_space<vmem>>, vector<1x32xf32>
    %29 = vector.broadcast %28 : vector<1x32xf32> to vector<8x32xf32>
    %30 = arith.mulf %27, %29 : vector<8x32xf32>
    %c0_14 = arith.constant 0 : index
    %c0_15 = arith.constant 0 : index
    %31 = vector.load %arg6[%c0_14, %c0_15] : memref<1x32xf32, #tpu.memory_space<vmem>>, vector<1x32xf32>
    %32 = vector.broadcast %31 : vector<1x32xf32> to vector<8x32xf32>
    %33 = arith.addf %30, %32 : vector<8x32xf32>
    %34 = arith.truncf %33 : vector<8x32xf32> to vector<8x32xbf16>
    %c0_16 = arith.constant 0 : index
    %c0_17 = arith.constant 0 : index
    %c0_18 = arith.constant 0 : index
    %35 = vector.load %arg7[%c0_16, %c0_17, %c0_18] : memref<1x8x32xbf16, #tpu.memory_space<vmem>>, vector<1x8x32xbf16>
    %36 = vector.shape_cast %35 : vector<1x8x32xbf16> to vector<8x32xbf16>
    %37 = vector.shape_cast %34 : vector<8x32xbf16> to vector<1x8x32xbf16>
    tpu.vector_store %arg7[%c0_16, %c0_17, %c0_18], %37 {strides = array<i32>} : memref<1x8x32xbf16, #tpu.memory_space<vmem>>, vector<1x8x32xbf16>,
    return
  }
  func.func @transform_0(%arg0: i32, %arg1: i32) -> (i32, i32, i32) {
    %c0_i32 = arith.constant 0 : i32
    %c0_i32_0 = arith.constant 0 : i32
    return %arg0, %arg1, %c0_i32 : i32, i32, i32
  }
  func.func @transform_1(%arg0: i32, %arg1: i32) -> (i32, i32, i32) {
    %c0_i32 = arith.constant 0 : i32
    %c0_i32_0 = arith.constant 0 : i32
    %c0_i32_1 = arith.constant 0 : i32
    return %c0_i32, %arg1, %c0_i32_0 : i32, i32, i32
  }
  func.func @transform_2(%arg0: i32, %arg1: i32) -> (i32, i32, i32) {
    %c0_i32 = arith.constant 0 : i32
    %c0_i32_0 = arith.constant 0 : i32
    %c0_i32_1 = arith.constant 0 : i32
    %c0_i32_2 = arith.constant 0 : i32
    return %c0_i32, %c0_i32_0, %c0_i32_1 : i32, i32, i32
  }
  func.func @transform_3(%arg0: i32, %arg1: i32) -> (i32, i32) {
    %c0_i32 = arith.constant 0 : i32
    %c0_i32_0 = arith.constant 0 : i32
    %c0_i32_1 = arith.constant 0 : i32
    return %c0_i32, %c0_i32_0 : i32, i32
  }
  func.func @transform_4(%arg0: i32, %arg1: i32) -> (i32, i32) {
    %c0_i32 = arith.constant 0 : i32
    %c0_i32_0 = arith.constant 0 : i32
    %c0_i32_1 = arith.constant 0 : i32
    return %c0_i32, %c0_i32_0 : i32, i32
  }
  func.func @transform_5(%arg0: i32, %arg1: i32) -> (i32, i32, i32) {
    %c0_i32 = arith.constant 0 : i32
    %c0_i32_0 = arith.constant 0 : i32
    return %arg0, %arg1, %c0_i32 : i32, i32, i32
  }
}

module attributes {stable_mosaic.version = 11 : i64} {
  func.func @_dense_kernel(%arg0: i32, %arg1: i32, %arg2: memref<16x32xbf16, #tpu.memory_space<vmem>>, %arg3: memref<32x96xbf16, #tpu.memory_space<vmem>>, %arg4: memref<1x96xf32, #tpu.memory_space<vmem>>, %arg5: memref<16x96xbf16, #tpu.memory_space<vmem>>) attributes {dimension_semantics = [#tpu.dimension_semantics<parallel>, #tpu.dimension_semantics<parallel>], iteration_bounds = array<i64: 1, 1>, scalar_prefetch = 0 : i64, scratch_operands = 0 : i64, tpu.core_type = #tpu.core_type<tc>, window_params = [{transform_indices = @transform_0, window_bounds = array<i64: 16, 32>}, {transform_indices = @transform_1, window_bounds = array<i64: 32, 96>}, {transform_indices = @transform_2, window_bounds = array<i64: 1, 96>}, {transform_indices = @transform_3, window_bounds = array<i64: 16, 96>}]} {
    %c0 = arith.constant 0 : index
    %c0_0 = arith.constant 0 : index
    %0 = vector.load %arg2[%c0, %c0_0] : memref<16x32xbf16, #tpu.memory_space<vmem>>, vector<16x32xbf16>
    %c0_1 = arith.constant 0 : index
    %c0_2 = arith.constant 0 : index
    %1 = vector.load %arg3[%c0_1, %c0_2] : memref<32x96xbf16, #tpu.memory_space<vmem>>, vector<32x96xbf16>
    %cst = arith.constant dense<0.000000e+00> : vector<16x96xf32>
    %2 = tpu.matmul %0, %1, %cst {dimension_numbers = #tpu.dot_dimension_numbers<[1], [0], [0], [1], [0, 0, 1, 1], [], []>} : vector<16x32xbf16>, vector<32x96xbf16>, vector<16x96xf32> -> vector<16x96xf32>
    %c0_3 = arith.constant 0 : index
    %c0_4 = arith.constant 0 : index
    %3 = vector.load %arg4[%c0_3, %c0_4] : memref<1x96xf32, #tpu.memory_space<vmem>>, vector<1x96xf32>
    %4 = vector.broadcast %3 : vector<1x96xf32> to vector<16x96xf32>
    %5 = arith.addf %2, %4 : vector<16x96xf32>
    %6 = arith.truncf %5 : vector<16x96xf32> to vector<16x96xbf16>
    %c0_5 = arith.constant 0 : index
    %c0_6 = arith.constant 0 : index
    %7 = vector.load %arg5[%c0_5, %c0_6] : memref<16x96xbf16, #tpu.memory_space<vmem>>, vector<16x96xbf16>
    tpu.vector_store %arg5[%c0_5, %c0_6], %6 {strides = array<i32>} : memref<16x96xbf16, #tpu.memory_space<vmem>>, vector<16x96xbf16>,
    return
  }
  func.func @transform_0(%arg0: i32, %arg1: i32) -> (i32, i32) {
    %c0_i32 = arith.constant 0 : i32
    %c0_i32_0 = arith.constant 0 : i32
    return %arg1, %c0_i32 : i32, i32
  }
  func.func @transform_1(%arg0: i32, %arg1: i32) -> (i32, i32) {
    %c0_i32 = arith.constant 0 : i32
    %c0_i32_0 = arith.constant 0 : i32
    return %c0_i32, %arg0 : i32, i32
  }
  func.func @transform_2(%arg0: i32, %arg1: i32) -> (i32, i32) {
    %c0_i32 = arith.constant 0 : i32
    %c0_i32_0 = arith.constant 0 : i32
    return %c0_i32, %arg0 : i32, i32
  }
  func.func @transform_3(%arg0: i32, %arg1: i32) -> (i32, i32) {
    %c0_i32 = arith.constant 0 : i32
    return %arg1, %arg0 : i32, i32
  }
}

module attributes {stable_mosaic.version = 11 : i64} {
  func.func @_attention_kernel(%arg0: i32, %arg1: i32, %arg2: memref<1x8x96xbf16, #tpu.memory_space<vmem>>, %arg3: memref<1x1x8xf32, #tpu.memory_space<vmem>>, %arg4: memref<1x8x32xbf16, #tpu.memory_space<vmem>>) attributes {dimension_semantics = [#tpu.dimension_semantics<parallel>, #tpu.dimension_semantics<parallel>], iteration_bounds = array<i64: 2, 1>, scalar_prefetch = 0 : i64, scratch_operands = 0 : i64, tpu.core_type = #tpu.core_type<tc>, window_params = [{transform_indices = @transform_0, window_bounds = array<i64: 1, 8, 96>}, {transform_indices = @transform_1, window_bounds = array<i64: 1, 1, 8>}, {transform_indices = @transform_2, window_bounds = array<i64: 1, 8, 32>}]} {
    %c8_i32 = arith.constant 8 : i32
    %0 = arith.muli %arg1, %c8_i32 : i32
    %1 = tpu.assume_multiple %0, 8 : i32
    %c0 = arith.constant 0 : index
    %c0_0 = arith.constant 0 : index
    %c0_1 = arith.constant 0 : index
    %2 = vector.load %arg3[%c0, %c0_0, %c0_1] : memref<1x1x8xf32, #tpu.memory_space<vmem>>, vector<1x1x8xf32>
    %3 = vector.shape_cast %2 : vector<1x1x8xf32> to vector<1x8xf32>
    %c0_2 = arith.constant 0 : index
    %4 = arith.index_cast %1 : i32 to index
    %c0_3 = arith.constant 0 : index
    %5 = vector.load %arg2[%c0_2, %4, %c0_3] : memref<1x8x96xbf16, #tpu.memory_space<vmem>>, vector<1x8x16xbf16>
    %6 = vector.shape_cast %5 : vector<1x8x16xbf16> to vector<8x16xbf16>
    %c0_4 = arith.constant 0 : index
    %c0_5 = arith.constant 0 : index
    %c32 = arith.constant 32 : index
    %7 = vector.load %arg2[%c0_4, %c0_5, %c32] : memref<1x8x96xbf16, #tpu.memory_space<vmem>>, vector<1x8x16xbf16>
    %8 = vector.shape_cast %7 : vector<1x8x16xbf16> to vector<8x16xbf16>
    %c0_6 = arith.constant 0 : index
    %c0_7 = arith.constant 0 : index
    %c64 = arith.constant 64 : index
    %9 = vector.load %arg2[%c0_6, %c0_7, %c64] : memref<1x8x96xbf16, #tpu.memory_space<vmem>>, vector<1x8x16xbf16>
    %10 = vector.shape_cast %9 : vector<1x8x16xbf16> to vector<8x16xbf16>
    %cst = arith.constant dense<0.000000e+00> : vector<8x8xf32>
    %11 = tpu.matmul %6, %8, %cst {dimension_numbers = #tpu.dot_dimension_numbers<[1], [1], [0], [0], [0, 0, 1, 0], [], []>} : vector<8x16xbf16>, vector<8x16xbf16>, vector<8x8xf32> -> vector<8x8xf32>
    %12 = vector.broadcast %3 : vector<1x8xf32> to vector<8x8xf32>
    %13 = arith.addf %11, %12 : vector<8x8xf32>
    %cst_8 = arith.constant dense<0xFF800000> : vector<8xf32>
    %14 = vector.multi_reduction <maximumf>, %13, %cst_8 [1] : vector<8x8xf32> to vector<8xf32>
    %15 = vector.shape_cast %14 : vector<8xf32> to vector<8x1xf32>
    %16 = vector.broadcast %15 : vector<8x1xf32> to vector<8x8xf32>
    %17 = arith.subf %13, %16 : vector<8x8xf32>
    %18 = math.exp %17 : vector<8x8xf32>
    %cst_9 = arith.constant dense<0.000000e+00> : vector<8xf32>
    %19 = vector.multi_reduction <add>, %18, %cst_9 [1] : vector<8x8xf32> to vector<8xf32>
    %20 = vector.shape_cast %19 : vector<8xf32> to vector<8x1xf32>
    %21 = arith.truncf %18 : vector<8x8xf32> to vector<8x8xbf16>
    %cst_10 = arith.constant dense<0.000000e+00> : vector<8x16xf32>
    %22 = tpu.matmul %21, %10, %cst_10 {dimension_numbers = #tpu.dot_dimension_numbers<[1], [0], [0], [1], [0, 0, 1, 1], [], []>} : vector<8x8xbf16>, vector<8x16xbf16>, vector<8x16xf32> -> vector<8x16xf32>
    %23 = vector.broadcast %20 : vector<8x1xf32> to vector<8x16xf32>
    %24 = arith.divf %22, %23 : vector<8x16xf32>
    %c0_11 = arith.constant 0 : index
    %25 = arith.index_cast %1 : i32 to index
    %c16 = arith.constant 16 : index
    %26 = vector.load %arg2[%c0_11, %25, %c16] : memref<1x8x96xbf16, #tpu.memory_space<vmem>>, vector<1x8x16xbf16>
    %27 = vector.shape_cast %26 : vector<1x8x16xbf16> to vector<8x16xbf16>
    %c0_12 = arith.constant 0 : index
    %c0_13 = arith.constant 0 : index
    %c48 = arith.constant 48 : index
    %28 = vector.load %arg2[%c0_12, %c0_13, %c48] : memref<1x8x96xbf16, #tpu.memory_space<vmem>>, vector<1x8x16xbf16>
    %29 = vector.shape_cast %28 : vector<1x8x16xbf16> to vector<8x16xbf16>
    %c0_14 = arith.constant 0 : index
    %c0_15 = arith.constant 0 : index
    %c80 = arith.constant 80 : index
    %30 = vector.load %arg2[%c0_14, %c0_15, %c80] : memref<1x8x96xbf16, #tpu.memory_space<vmem>>, vector<1x8x16xbf16>
    %31 = vector.shape_cast %30 : vector<1x8x16xbf16> to vector<8x16xbf16>
    %cst_16 = arith.constant dense<0.000000e+00> : vector<8x8xf32>
    %32 = tpu.matmul %27, %29, %cst_16 {dimension_numbers = #tpu.dot_dimension_numbers<[1], [1], [0], [0], [0, 0, 1, 0], [], []>} : vector<8x16xbf16>, vector<8x16xbf16>, vector<8x8xf32> -> vector<8x8xf32>
    %33 = vector.broadcast %3 : vector<1x8xf32> to vector<8x8xf32>
    %34 = arith.addf %32, %33 : vector<8x8xf32>
    %cst_17 = arith.constant dense<0xFF800000> : vector<8xf32>
    %35 = vector.multi_reduction <maximumf>, %34, %cst_17 [1] : vector<8x8xf32> to vector<8xf32>
    %36 = vector.shape_cast %35 : vector<8xf32> to vector<8x1xf32>
    %37 = vector.broadcast %36 : vector<8x1xf32> to vector<8x8xf32>
    %38 = arith.subf %34, %37 : vector<8x8xf32>
    %39 = math.exp %38 : vector<8x8xf32>
    %cst_18 = arith.constant dense<0.000000e+00> : vector<8xf32>
    %40 = vector.multi_reduction <add>, %39, %cst_18 [1] : vector<8x8xf32> to vector<8xf32>
    %41 = vector.shape_cast %40 : vector<8xf32> to vector<8x1xf32>
    %42 = arith.truncf %39 : vector<8x8xf32> to vector<8x8xbf16>
    %cst_19 = arith.constant dense<0.000000e+00> : vector<8x16xf32>
    %43 = tpu.matmul %42, %31, %cst_19 {dimension_numbers = #tpu.dot_dimension_numbers<[1], [0], [0], [1], [0, 0, 1, 1], [], []>} : vector<8x8xbf16>, vector<8x16xbf16>, vector<8x16xf32> -> vector<8x16xf32>
    %44 = vector.broadcast %41 : vector<8x1xf32> to vector<8x16xf32>
    %45 = arith.divf %43, %44 : vector<8x16xf32>
    %46 = tpu.concatenate %24, %45 in 1 : vector<8x16xf32>, vector<8x16xf32> -> vector<8x32xf32>
    %47 = arith.truncf %46 : vector<8x32xf32> to vector<8x32xbf16>
    %c0_20 = arith.constant 0 : index
    %c0_21 = arith.constant 0 : index
    %c0_22 = arith.constant 0 : index
    %48 = vector.load %arg4[%c0_20, %c0_21, %c0_22] : memref<1x8x32xbf16, #tpu.memory_space<vmem>>, vector<1x8x32xbf16>
    %49 = vector.shape_cast %48 : vector<1x8x32xbf16> to vector<8x32xbf16>
    %50 = vector.shape_cast %47 : vector<8x32xbf16> to vector<1x8x32xbf16>
    tpu.vector_store %arg4[%c0_20, %c0_21, %c0_22], %50 {strides = array<i32>} : memref<1x8x32xbf16, #tpu.memory_space<vmem>>, vector<1x8x32xbf16>,
    return
  }
  func.func @transform_0(%arg0: i32, %arg1: i32) -> (i32, i32, i32) {
    %c0_i32 = arith.constant 0 : i32
    %c0_i32_0 = arith.constant 0 : i32
    %c0_i32_1 = arith.constant 0 : i32
    return %arg0, %c0_i32, %c0_i32_0 : i32, i32, i32
  }
  func.func @transform_1(%arg0: i32, %arg1: i32) -> (i32, i32, i32) {
    %c0_i32 = arith.constant 0 : i32
    %c0_i32_0 = arith.constant 0 : i32
    %c0_i32_1 = arith.constant 0 : i32
    return %arg0, %c0_i32, %c0_i32_0 : i32, i32, i32
  }
  func.func @transform_2(%arg0: i32, %arg1: i32) -> (i32, i32, i32) {
    %c0_i32 = arith.constant 0 : i32
    %c0_i32_0 = arith.constant 0 : i32
    return %arg0, %arg1, %c0_i32 : i32, i32, i32
  }
}

module attributes {stable_mosaic.version = 11 : i64} {
  func.func @_dense_ln_kernel(%arg0: i32, %arg1: memref<16x32xbf16, #tpu.memory_space<vmem>>, %arg2: memref<32x32xbf16, #tpu.memory_space<vmem>>, %arg3: memref<1x32xf32, #tpu.memory_space<vmem>>, %arg4: memref<16x32xbf16, #tpu.memory_space<vmem>>, %arg5: memref<1x32xf32, #tpu.memory_space<vmem>>, %arg6: memref<1x32xf32, #tpu.memory_space<vmem>>, %arg7: memref<16x32xbf16, #tpu.memory_space<vmem>>) attributes {dimension_semantics = [#tpu.dimension_semantics<parallel>], iteration_bounds = array<i64: 1>, scalar_prefetch = 0 : i64, scratch_operands = 0 : i64, tpu.core_type = #tpu.core_type<tc>, window_params = [{transform_indices = @transform_0, window_bounds = array<i64: 16, 32>}, {pipeline_mode = #tpu.pipeline_mode<synchronous>, transform_indices = @transform_1, window_bounds = array<i64: 32, 32>}, {pipeline_mode = #tpu.pipeline_mode<synchronous>, transform_indices = @transform_2, window_bounds = array<i64: 1, 32>}, {transform_indices = @transform_3, window_bounds = array<i64: 16, 32>}, {pipeline_mode = #tpu.pipeline_mode<synchronous>, transform_indices = @transform_4, window_bounds = array<i64: 1, 32>}, {pipeline_mode = #tpu.pipeline_mode<synchronous>, transform_indices = @transform_5, window_bounds = array<i64: 1, 32>}, {transform_indices = @transform_6, window_bounds = array<i64: 16, 32>}]} {
    %c0 = arith.constant 0 : index
    %c0_0 = arith.constant 0 : index
    %0 = vector.load %arg1[%c0, %c0_0] : memref<16x32xbf16, #tpu.memory_space<vmem>>, vector<16x32xbf16>
    %c0_1 = arith.constant 0 : index
    %c0_2 = arith.constant 0 : index
    %1 = vector.load %arg2[%c0_1, %c0_2] : memref<32x32xbf16, #tpu.memory_space<vmem>>, vector<32x32xbf16>
    %cst = arith.constant dense<0.000000e+00> : vector<16x32xf32>
    %2 = tpu.matmul %0, %1, %cst {dimension_numbers = #tpu.dot_dimension_numbers<[1], [0], [0], [1], [0, 0, 1, 1], [], []>} : vector<16x32xbf16>, vector<32x32xbf16>, vector<16x32xf32> -> vector<16x32xf32>
    %c0_3 = arith.constant 0 : index
    %c0_4 = arith.constant 0 : index
    %3 = vector.load %arg3[%c0_3, %c0_4] : memref<1x32xf32, #tpu.memory_space<vmem>>, vector<1x32xf32>
    %4 = vector.broadcast %3 : vector<1x32xf32> to vector<16x32xf32>
    %5 = arith.addf %2, %4 : vector<16x32xf32>
    %c0_5 = arith.constant 0 : index
    %c0_6 = arith.constant 0 : index
    %6 = vector.load %arg4[%c0_5, %c0_6] : memref<16x32xbf16, #tpu.memory_space<vmem>>, vector<16x32xbf16>
    %7 = arith.extf %6 : vector<16x32xbf16> to vector<16x32xf32>
    %8 = arith.addf %5, %7 : vector<16x32xf32>
    %cst_7 = arith.constant dense<0.000000e+00> : vector<16xf32>
    %9 = vector.multi_reduction <add>, %8, %cst_7 [1] : vector<16x32xf32> to vector<16xf32>
    %10 = vector.shape_cast %9 : vector<16xf32> to vector<16x1xf32>
    %cst_8 = arith.constant 3.200000e+01 : f32
    %11 = vector.broadcast %cst_8 : f32 to vector<16x1xf32>
    %12 = arith.divf %10, %11 : vector<16x1xf32>
    %13 = vector.broadcast %12 : vector<16x1xf32> to vector<16x32xf32>
    %14 = arith.subf %8, %13 : vector<16x32xf32>
    %15 = arith.mulf %14, %14 : vector<16x32xf32>
    %cst_9 = arith.constant dense<0.000000e+00> : vector<16xf32>
    %16 = vector.multi_reduction <add>, %15, %cst_9 [1] : vector<16x32xf32> to vector<16xf32>
    %17 = vector.shape_cast %16 : vector<16xf32> to vector<16x1xf32>
    %cst_10 = arith.constant 3.200000e+01 : f32
    %18 = vector.broadcast %cst_10 : f32 to vector<16x1xf32>
    %19 = arith.divf %17, %18 : vector<16x1xf32>
    %cst_11 = arith.constant 9.99999996E-13 : f32
    %20 = vector.broadcast %cst_11 : f32 to vector<16x1xf32>
    %21 = arith.addf %19, %20 : vector<16x1xf32>
    %22 = math.rsqrt %21 : vector<16x1xf32>
    %23 = vector.broadcast %22 : vector<16x1xf32> to vector<16x32xf32>
    %24 = arith.mulf %14, %23 : vector<16x32xf32>
    %c0_12 = arith.constant 0 : index
    %c0_13 = arith.constant 0 : index
    %25 = vector.load %arg5[%c0_12, %c0_13] : memref<1x32xf32, #tpu.memory_space<vmem>>, vector<1x32xf32>
    %26 = vector.broadcast %25 : vector<1x32xf32> to vector<16x32xf32>
    %27 = arith.mulf %24, %26 : vector<16x32xf32>
    %c0_14 = arith.constant 0 : index
    %c0_15 = arith.constant 0 : index
    %28 = vector.load %arg6[%c0_14, %c0_15] : memref<1x32xf32, #tpu.memory_space<vmem>>, vector<1x32xf32>
    %29 = vector.broadcast %28 : vector<1x32xf32> to vector<16x32xf32>
    %30 = arith.addf %27, %29 : vector<16x32xf32>
    %31 = arith.truncf %30 : vector<16x32xf32> to vector<16x32xbf16>
    %c0_16 = arith.constant 0 : index
    %c0_17 = arith.constant 0 : index
    %32 = vector.load %arg7[%c0_16, %c0_17] : memref<16x32xbf16, #tpu.memory_space<vmem>>, vector<16x32xbf16>
    tpu.vector_store %arg7[%c0_16, %c0_17], %31 {strides = array<i32>} : memref<16x32xbf16, #tpu.memory_space<vmem>>, vector<16x32xbf16>,
    return
  }
  func.func @transform_0(%arg0: i32) -> (i32, i32) {
    %c0_i32 = arith.constant 0 : i32
    %c0_i32_0 = arith.constant 0 : i32
    return %arg0, %c0_i32 : i32, i32
  }
  func.func @transform_1(%arg0: i32) -> (i32, i32) {
    %c0_i32 = arith.constant 0 : i32
    %c0_i32_0 = arith.constant 0 : i32
    %c0_i32_1 = arith.constant 0 : i32
    return %c0_i32, %c0_i32_0 : i32, i32
  }
  func.func @transform_2(%arg0: i32) -> (i32, i32) {
    %c0_i32 = arith.constant 0 : i32
    %c0_i32_0 = arith.constant 0 : i32
    %c0_i32_1 = arith.constant 0 : i32
    return %c0_i32, %c0_i32_0 : i32, i32
  }
  func.func @transform_3(%arg0: i32) -> (i32, i32) {
    %c0_i32 = arith.constant 0 : i32
    %c0_i32_0 = arith.constant 0 : i32
    return %arg0, %c0_i32 : i32, i32
  }
  func.func @transform_4(%arg0: i32) -> (i32, i32) {
    %c0_i32 = arith.constant 0 : i32
    %c0_i32_0 = arith.constant 0 : i32
    %c0_i32_1 = arith.constant 0 : i32
    return %c0_i32, %c0_i32_0 : i32, i32
  }
  func.func @transform_5(%arg0: i32) -> (i32, i32) {
    %c0_i32 = arith.constant 0 : i32
    %c0_i32_0 = arith.constant 0 : i32
    %c0_i32_1 = arith.constant 0 : i32
    return %c0_i32, %c0_i32_0 : i32, i32
  }
  func.func @transform_6(%arg0: i32) -> (i32, i32) {
    %c0_i32 = arith.constant 0 : i32
    %c0_i32_0 = arith.constant 0 : i32
    return %arg0, %c0_i32 : i32, i32
  }
}

module attributes {stable_mosaic.version = 11 : i64} {
  func.func @_dense_ln_kernel(%arg0: i32, %arg1: memref<16x128xbf16, #tpu.memory_space<vmem>>, %arg2: memref<128x32xbf16, #tpu.memory_space<vmem>>, %arg3: memref<1x32xf32, #tpu.memory_space<vmem>>, %arg4: memref<16x32xbf16, #tpu.memory_space<vmem>>, %arg5: memref<1x32xf32, #tpu.memory_space<vmem>>, %arg6: memref<1x32xf32, #tpu.memory_space<vmem>>, %arg7: memref<16x32xbf16, #tpu.memory_space<vmem>>) attributes {dimension_semantics = [#tpu.dimension_semantics<parallel>], iteration_bounds = array<i64: 1>, scalar_prefetch = 0 : i64, scratch_operands = 0 : i64, tpu.core_type = #tpu.core_type<tc>, window_params = [{transform_indices = @transform_0, window_bounds = array<i64: 16, 128>}, {pipeline_mode = #tpu.pipeline_mode<synchronous>, transform_indices = @transform_1, window_bounds = array<i64: 128, 32>}, {pipeline_mode = #tpu.pipeline_mode<synchronous>, transform_indices = @transform_2, window_bounds = array<i64: 1, 32>}, {transform_indices = @transform_3, window_bounds = array<i64: 16, 32>}, {pipeline_mode = #tpu.pipeline_mode<synchronous>, transform_indices = @transform_4, window_bounds = array<i64: 1, 32>}, {pipeline_mode = #tpu.pipeline_mode<synchronous>, transform_indices = @transform_5, window_bounds = array<i64: 1, 32>}, {transform_indices = @transform_6, window_bounds = array<i64: 16, 32>}]} {
    %c0 = arith.constant 0 : index
    %c0_0 = arith.constant 0 : index
    %0 = vector.load %arg1[%c0, %c0_0] : memref<16x128xbf16, #tpu.memory_space<vmem>>, vector<16x128xbf16>
    %c0_1 = arith.constant 0 : index
    %c0_2 = arith.constant 0 : index
    %1 = vector.load %arg2[%c0_1, %c0_2] : memref<128x32xbf16, #tpu.memory_space<vmem>>, vector<128x32xbf16>
    %cst = arith.constant dense<0.000000e+00> : vector<16x32xf32>
    %2 = tpu.matmul %0, %1, %cst {dimension_numbers = #tpu.dot_dimension_numbers<[1], [0], [0], [1], [0, 0, 1, 1], [], []>} : vector<16x128xbf16>, vector<128x32xbf16>, vector<16x32xf32> -> vector<16x32xf32>
    %c0_3 = arith.constant 0 : index
    %c0_4 = arith.constant 0 : index
    %3 = vector.load %arg3[%c0_3, %c0_4] : memref<1x32xf32, #tpu.memory_space<vmem>>, vector<1x32xf32>
    %4 = vector.broadcast %3 : vector<1x32xf32> to vector<16x32xf32>
    %5 = arith.addf %2, %4 : vector<16x32xf32>
    %c0_5 = arith.constant 0 : index
    %c0_6 = arith.constant 0 : index
    %6 = vector.load %arg4[%c0_5, %c0_6] : memref<16x32xbf16, #tpu.memory_space<vmem>>, vector<16x32xbf16>
    %7 = arith.extf %6 : vector<16x32xbf16> to vector<16x32xf32>
    %8 = arith.addf %5, %7 : vector<16x32xf32>
    %cst_7 = arith.constant dense<0.000000e+00> : vector<16xf32>
    %9 = vector.multi_reduction <add>, %8, %cst_7 [1] : vector<16x32xf32> to vector<16xf32>
    %10 = vector.shape_cast %9 : vector<16xf32> to vector<16x1xf32>
    %cst_8 = arith.constant 3.200000e+01 : f32
    %11 = vector.broadcast %cst_8 : f32 to vector<16x1xf32>
    %12 = arith.divf %10, %11 : vector<16x1xf32>
    %13 = vector.broadcast %12 : vector<16x1xf32> to vector<16x32xf32>
    %14 = arith.subf %8, %13 : vector<16x32xf32>
    %15 = arith.mulf %14, %14 : vector<16x32xf32>
    %cst_9 = arith.constant dense<0.000000e+00> : vector<16xf32>
    %16 = vector.multi_reduction <add>, %15, %cst_9 [1] : vector<16x32xf32> to vector<16xf32>
    %17 = vector.shape_cast %16 : vector<16xf32> to vector<16x1xf32>
    %cst_10 = arith.constant 3.200000e+01 : f32
    %18 = vector.broadcast %cst_10 : f32 to vector<16x1xf32>
    %19 = arith.divf %17, %18 : vector<16x1xf32>
    %cst_11 = arith.constant 9.99999996E-13 : f32
    %20 = vector.broadcast %cst_11 : f32 to vector<16x1xf32>
    %21 = arith.addf %19, %20 : vector<16x1xf32>
    %22 = math.rsqrt %21 : vector<16x1xf32>
    %23 = vector.broadcast %22 : vector<16x1xf32> to vector<16x32xf32>
    %24 = arith.mulf %14, %23 : vector<16x32xf32>
    %c0_12 = arith.constant 0 : index
    %c0_13 = arith.constant 0 : index
    %25 = vector.load %arg5[%c0_12, %c0_13] : memref<1x32xf32, #tpu.memory_space<vmem>>, vector<1x32xf32>
    %26 = vector.broadcast %25 : vector<1x32xf32> to vector<16x32xf32>
    %27 = arith.mulf %24, %26 : vector<16x32xf32>
    %c0_14 = arith.constant 0 : index
    %c0_15 = arith.constant 0 : index
    %28 = vector.load %arg6[%c0_14, %c0_15] : memref<1x32xf32, #tpu.memory_space<vmem>>, vector<1x32xf32>
    %29 = vector.broadcast %28 : vector<1x32xf32> to vector<16x32xf32>
    %30 = arith.addf %27, %29 : vector<16x32xf32>
    %31 = arith.truncf %30 : vector<16x32xf32> to vector<16x32xbf16>
    %c0_16 = arith.constant 0 : index
    %c0_17 = arith.constant 0 : index
    %32 = vector.load %arg7[%c0_16, %c0_17] : memref<16x32xbf16, #tpu.memory_space<vmem>>, vector<16x32xbf16>
    tpu.vector_store %arg7[%c0_16, %c0_17], %31 {strides = array<i32>} : memref<16x32xbf16, #tpu.memory_space<vmem>>, vector<16x32xbf16>,
    return
  }
  func.func @transform_0(%arg0: i32) -> (i32, i32) {
    %c0_i32 = arith.constant 0 : i32
    %c0_i32_0 = arith.constant 0 : i32
    return %arg0, %c0_i32 : i32, i32
  }
  func.func @transform_1(%arg0: i32) -> (i32, i32) {
    %c0_i32 = arith.constant 0 : i32
    %c0_i32_0 = arith.constant 0 : i32
    %c0_i32_1 = arith.constant 0 : i32
    return %c0_i32, %c0_i32_0 : i32, i32
  }
  func.func @transform_2(%arg0: i32) -> (i32, i32) {
    %c0_i32 = arith.constant 0 : i32
    %c0_i32_0 = arith.constant 0 : i32
    %c0_i32_1 = arith.constant 0 : i32
    return %c0_i32, %c0_i32_0 : i32, i32
  }
  func.func @transform_3(%arg0: i32) -> (i32, i32) {
    %c0_i32 = arith.constant 0 : i32
    %c0_i32_0 = arith.constant 0 : i32
    return %arg0, %c0_i32 : i32, i32
  }
  func.func @transform_4(%arg0: i32) -> (i32, i32) {
    %c0_i32 = arith.constant 0 : i32
    %c0_i32_0 = arith.constant 0 : i32
    %c0_i32_1 = arith.constant 0 : i32
    return %c0_i32, %c0_i32_0 : i32, i32
  }
  func.func @transform_5(%arg0: i32) -> (i32, i32) {
    %c0_i32 = arith.constant 0 : i32
    %c0_i32_0 = arith.constant 0 : i32
    %c0_i32_1 = arith.constant 0 : i32
    return %c0_i32, %c0_i32_0 : i32, i32
  }
  func.func @transform_6(%arg0: i32) -> (i32, i32) {
    %c0_i32 = arith.constant 0 : i32
    %c0_i32_0 = arith.constant 0 : i32
    return %arg0, %c0_i32 : i32, i32
  }
}

module attributes {stable_mosaic.version = 11 : i64} {
  func.func @_dense_kernel(%arg0: i32, %arg1: i32, %arg2: memref<16x32xbf16, #tpu.memory_space<vmem>>, %arg3: memref<32x128xbf16, #tpu.memory_space<vmem>>, %arg4: memref<1x128xf32, #tpu.memory_space<vmem>>, %arg5: memref<16x128xbf16, #tpu.memory_space<vmem>>) attributes {dimension_semantics = [#tpu.dimension_semantics<parallel>, #tpu.dimension_semantics<parallel>], iteration_bounds = array<i64: 1, 1>, scalar_prefetch = 0 : i64, scratch_operands = 0 : i64, tpu.core_type = #tpu.core_type<tc>, window_params = [{transform_indices = @transform_0, window_bounds = array<i64: 16, 32>}, {transform_indices = @transform_1, window_bounds = array<i64: 32, 128>}, {transform_indices = @transform_2, window_bounds = array<i64: 1, 128>}, {transform_indices = @transform_3, window_bounds = array<i64: 16, 128>}]} {
    %c0 = arith.constant 0 : index
    %c0_0 = arith.constant 0 : index
    %0 = vector.load %arg2[%c0, %c0_0] : memref<16x32xbf16, #tpu.memory_space<vmem>>, vector<16x32xbf16>
    %c0_1 = arith.constant 0 : index
    %c0_2 = arith.constant 0 : index
    %1 = vector.load %arg3[%c0_1, %c0_2] : memref<32x128xbf16, #tpu.memory_space<vmem>>, vector<32x128xbf16>
    %cst = arith.constant dense<0.000000e+00> : vector<16x128xf32>
    %2 = tpu.matmul %0, %1, %cst {dimension_numbers = #tpu.dot_dimension_numbers<[1], [0], [0], [1], [0, 0, 1, 1], [], []>} : vector<16x32xbf16>, vector<32x128xbf16>, vector<16x128xf32> -> vector<16x128xf32>
    %c0_3 = arith.constant 0 : index
    %c0_4 = arith.constant 0 : index
    %3 = vector.load %arg4[%c0_3, %c0_4] : memref<1x128xf32, #tpu.memory_space<vmem>>, vector<1x128xf32>
    %4 = vector.broadcast %3 : vector<1x128xf32> to vector<16x128xf32>
    %5 = arith.addf %2, %4 : vector<16x128xf32>
    %cst_5 = arith.constant 5.000000e-01 : f32
    %6 = vector.broadcast %cst_5 : f32 to vector<16x128xf32>
    %7 = arith.mulf %6, %5 : vector<16x128xf32>
    %cst_6 = arith.constant 4.471500e-02 : f32
    %8 = vector.broadcast %cst_6 : f32 to vector<16x128xf32>
    %9 = arith.mulf %8, %5 : vector<16x128xf32>
    %10 = arith.mulf %9, %5 : vector<16x128xf32>
    %11 = arith.mulf %10, %5 : vector<16x128xf32>
    %12 = arith.addf %5, %11 : vector<16x128xf32>
    %cst_7 = arith.constant 0.797884583 : f32
    %13 = vector.broadcast %cst_7 : f32 to vector<16x128xf32>
    %14 = arith.mulf %13, %12 : vector<16x128xf32>
    %15 = math.tanh %14 : vector<16x128xf32>
    %cst_8 = arith.constant 1.000000e+00 : f32
    %16 = vector.broadcast %cst_8 : f32 to vector<16x128xf32>
    %17 = arith.addf %16, %15 : vector<16x128xf32>
    %18 = arith.mulf %7, %17 : vector<16x128xf32>
    %19 = arith.truncf %18 : vector<16x128xf32> to vector<16x128xbf16>
    %c0_9 = arith.constant 0 : index
    %c0_10 = arith.constant 0 : index
    %20 = vector.load %arg5[%c0_9, %c0_10] : memref<16x128xbf16, #tpu.memory_space<vmem>>, vector<16x128xbf16>
    tpu.vector_store %arg5[%c0_9, %c0_10], %19 {strides = array<i32>} : memref<16x128xbf16, #tpu.memory_space<vmem>>, vector<16x128xbf16>,
    return
  }
  func.func @transform_0(%arg0: i32, %arg1: i32) -> (i32, i32) {
    %c0_i32 = arith.constant 0 : i32
    %c0_i32_0 = arith.constant 0 : i32
    return %arg1, %c0_i32 : i32, i32
  }
  func.func @transform_1(%arg0: i32, %arg1: i32) -> (i32, i32) {
    %c0_i32 = arith.constant 0 : i32
    %c0_i32_0 = arith.constant 0 : i32
    return %c0_i32, %arg0 : i32, i32
  }
  func.func @transform_2(%arg0: i32, %arg1: i32) -> (i32, i32) {
    %c0_i32 = arith.constant 0 : i32
    %c0_i32_0 = arith.constant 0 : i32
    return %c0_i32, %arg0 : i32, i32
  }
  func.func @transform_3(%arg0: i32, %arg1: i32) -> (i32, i32) {
    %c0_i32 = arith.constant 0 : i32
    return %arg1, %arg0 : i32, i32
  }
}

module attributes {stable_mosaic.version = 11 : i64} {
  func.func @_head_kernel(%arg0: memref<2x32xbf16, #tpu.memory_space<vmem>>, %arg1: memref<32x32xf32, #tpu.memory_space<vmem>>, %arg2: memref<1x32xf32, #tpu.memory_space<vmem>>, %arg3: memref<32x10xf32, #tpu.memory_space<vmem>>, %arg4: memref<1x10xf32, #tpu.memory_space<vmem>>, %arg5: memref<2x10xf32, #tpu.memory_space<vmem>>, %arg6: memref<2x10xf32, #tpu.memory_space<vmem>>, %arg7: memref<1x1xf32, #tpu.memory_space<vmem>>) attributes {dimension_semantics = [], scalar_prefetch = 0 : i64, scratch_operands = 0 : i64, tpu.core_type = #tpu.core_type<tc>} {
    %c0 = arith.constant 0 : index
    %c0_0 = arith.constant 0 : index
    %0 = vector.load %arg0[%c0, %c0_0] : memref<2x32xbf16, #tpu.memory_space<vmem>>, vector<2x32xbf16>
    %c0_1 = arith.constant 0 : index
    %c0_2 = arith.constant 0 : index
    %1 = vector.load %arg1[%c0_1, %c0_2] : memref<32x32xf32, #tpu.memory_space<vmem>>, vector<32x32xf32>
    %2 = arith.truncf %1 : vector<32x32xf32> to vector<32x32xbf16>
    %cst = arith.constant dense<0.000000e+00> : vector<2x32xf32>
    %3 = tpu.matmul %0, %2, %cst {dimension_numbers = #tpu.dot_dimension_numbers<[1], [0], [0], [1], [0, 0, 1, 1], [], []>} : vector<2x32xbf16>, vector<32x32xbf16>, vector<2x32xf32> -> vector<2x32xf32>
    %c0_3 = arith.constant 0 : index
    %c0_4 = arith.constant 0 : index
    %4 = vector.load %arg2[%c0_3, %c0_4] : memref<1x32xf32, #tpu.memory_space<vmem>>, vector<1x32xf32>
    %5 = vector.broadcast %4 : vector<1x32xf32> to vector<2x32xf32>
    %6 = arith.addf %3, %5 : vector<2x32xf32>
    %7 = math.tanh %6 : vector<2x32xf32>
    %8 = arith.truncf %7 : vector<2x32xf32> to vector<2x32xbf16>
    %c0_5 = arith.constant 0 : index
    %c0_6 = arith.constant 0 : index
    %9 = vector.load %arg3[%c0_5, %c0_6] : memref<32x10xf32, #tpu.memory_space<vmem>>, vector<32x10xf32>
    %10 = arith.truncf %9 : vector<32x10xf32> to vector<32x10xbf16>
    %cst_7 = arith.constant dense<0.000000e+00> : vector<2x10xf32>
    %11 = tpu.matmul %8, %10, %cst_7 {dimension_numbers = #tpu.dot_dimension_numbers<[1], [0], [0], [1], [0, 0, 1, 1], [], []>} : vector<2x32xbf16>, vector<32x10xbf16>, vector<2x10xf32> -> vector<2x10xf32>
    %c0_8 = arith.constant 0 : index
    %c0_9 = arith.constant 0 : index
    %12 = vector.load %arg4[%c0_8, %c0_9] : memref<1x10xf32, #tpu.memory_space<vmem>>, vector<1x10xf32>
    %13 = vector.broadcast %12 : vector<1x10xf32> to vector<2x10xf32>
    %14 = arith.addf %11, %13 : vector<2x10xf32>
    %c0_10 = arith.constant 0 : index
    %c0_11 = arith.constant 0 : index
    %15 = vector.load %arg6[%c0_10, %c0_11] : memref<2x10xf32, #tpu.memory_space<vmem>>, vector<2x10xf32>
    tpu.vector_store %arg6[%c0_10, %c0_11], %14 {strides = array<i32>} : memref<2x10xf32, #tpu.memory_space<vmem>>, vector<2x10xf32>,
    %cst_12 = arith.constant dense<0xFF800000> : vector<2xf32>
    %16 = vector.multi_reduction <maximumf>, %14, %cst_12 [1] : vector<2x10xf32> to vector<2xf32>
    %17 = vector.shape_cast %16 : vector<2xf32> to vector<2x1xf32>
    %18 = vector.broadcast %17 : vector<2x1xf32> to vector<2x10xf32>
    %19 = arith.subf %14, %18 : vector<2x10xf32>
    %20 = math.exp %19 : vector<2x10xf32>
    %cst_13 = arith.constant dense<0.000000e+00> : vector<2xf32>
    %21 = vector.multi_reduction <add>, %20, %cst_13 [1] : vector<2x10xf32> to vector<2xf32>
    %22 = vector.shape_cast %21 : vector<2xf32> to vector<2x1xf32>
    %23 = math.log %22 : vector<2x1xf32>
    %24 = arith.addf %17, %23 : vector<2x1xf32>
    %c0_14 = arith.constant 0 : index
    %c0_15 = arith.constant 0 : index
    %25 = vector.load %arg5[%c0_14, %c0_15] : memref<2x10xf32, #tpu.memory_space<vmem>>, vector<2x10xf32>
    %26 = arith.mulf %14, %25 : vector<2x10xf32>
    %cst_16 = arith.constant dense<0.000000e+00> : vector<2xf32>
    %27 = vector.multi_reduction <add>, %26, %cst_16 [1] : vector<2x10xf32> to vector<2xf32>
    %28 = vector.shape_cast %27 : vector<2xf32> to vector<2x1xf32>
    %29 = arith.subf %24, %28 : vector<2x1xf32>
    %cst_17 = arith.constant dense<0.000000e+00> : vector<1xf32>
    %30 = vector.multi_reduction <add>, %29, %cst_17 [0] : vector<2x1xf32> to vector<1xf32>
    %31 = vector.shape_cast %30 : vector<1xf32> to vector<1x1xf32>
    %cst_18 = arith.constant 2.000000e+00 : f32
    %32 = vector.broadcast %cst_18 : f32 to vector<1x1xf32>
    %33 = arith.divf %31, %32 : vector<1x1xf32>
    %c0_19 = arith.constant 0 : index
    %c0_20 = arith.constant 0 : index
    %34 = vector.load %arg7[%c0_19, %c0_20] : memref<1x1xf32, #tpu.memory_space<vmem>>, vector<1x1xf32>
    tpu.vector_store %arg7[%c0_19, %c0_20], %33 {strides = array<i32>} : memref<1x1xf32, #tpu.memory_space<vmem>>, vector<1x1xf32>,
    return
  }
}

</mosaic_0001>

<bundles_post_ra>
// kernel: bert_forward.13
= control target key start
LH: loop header
LB: loop body
LE: loop exit
PB: predicated region body
PF: predicated region fallthrough
CT: control target
= control target key end

     0   :  { %v130_v0 = vmov 0.0   ;;  %vm131_vm0 = vmmov 0   ;;  %vm45_vm1 = vcmask 261120   ;;  %vm98_vm2 = vcmask 781312   ;;  %s170_s1 = inlined_call_operand.vmem [shape: bf16[32,96], index: 1, kind: input, shape index: {}]   ;;  %s171_s0 = inlined_call_operand.vmem [shape: bf16[16,32], index: 0, kind: input, shape index: {}]   ;;  %s172_s2 = inlined_call_operand.vmem [shape: f32[1,96], index: 2, kind: input, shape index: {}]   ;;  %s173_s3 = inlined_call_operand.vmem [shape: bf16[16,96], index: 3, kind: output, shape index: {}]  }
   0x1   :  { %117 = vmatprep.subr.bf16.mxu0 %v130_v0  ;;  %v127_v1 = vld [vmem:[%s170_s1] sm:$0xff]   ;;  %121 = vmatprep.mubr.msk.bf16.mxu0 %vm131_vm0, %v130_v0  ;;  %v128_v2 = vld [vmem:[%s170_s1 + $0x8] sm:$0xff]  }
   0x2   :  { %118 = vmatpush3.bf16.msra.mxu0 %v127_v1  ;;  %v129_v3 = vld [vmem:[%s171_s0] sm:$0xff]  }
   0x3   :  { %119 = vmatprep.subr.bf16.mxu0 %v130_v0  ;;  %v105_v4 = vld [vmem:[%s172_s2] ss:$0 sm:$0xff] }
   0x6   :  { %120 = vmatpush3.bf16.msra.mxu0 %v128_v2 }
   0x9   :  { %122 = vmatmul.mubr.msk.bf16.vlgmr.msra.gmra.mrb[0].mxu0 %vm45_vm1, %v129_v3 }
  0xdc   :  { %v83_v5 = vpop.f32.mrb[0].mxu0 }
  0xdd   :  { %v84_v6 = vadd.f32 %v105_v4, %v83_v5  ;;  %v123_v7 = vpop.f32.mrb[1].mxu0 }
  0xde   :  { %v86_v8 = vpop.f32.mrb[2].mxu0 }
  0xdf   :  { %v112_v9 = vpack.c.bf16 %v84_v6, %v84_v6  ;;  %v87_v10 = vadd.f32 %v105_v4, %v86_v8  ;;  %v124_v11 = vpop.f32.mrb[3].mxu0 }
  0xe1   :  { %99 = vst.msk [vmem:[%s173_s3] sm:$0xf] %vm98_vm2, %v112_v9  ;;  %v113_v12 = vpack.c.bf16 %v87_v10, %v87_v10 }
  0xe3   :  { %100 = vst.msk [vmem:[%s173_s3 + $0x4] sm:$0xf] %vm98_vm2, %v113_v12 }

// kernel: bert_forward.15
= control target key start
LH: loop header
LB: loop body
LE: loop exit
PB: predicated region body
PF: predicated region fallthrough
CT: control target
= control target key end

     0   :  { %v200_v0 = vmov 0.0   ;;  %vm201_vm0 = vmmov 0   ;;  %vm54_vm1 = vcmask 261120   ;;  %vm158_vm2 = vcmask 257024   ;;  %s269_s1 = inlined_call_operand.vmem [shape: bf16[32,32], index: 1, kind: input, shape index: {}]   ;;  %s270_s0 = inlined_call_operand.vmem [shape: bf16[16,32], index: 0, kind: input, shape index: {}]   ;;  %s271_s3 = inlined_call_operand.vmem [shape: bf16[16,32], index: 3, kind: input, shape index: {}]   ;;  %s272_s2 = inlined_call_operand.vmem [shape: f32[1,32], index: 2, kind: input, shape index: {}]   ;;  %s273_s4 = inlined_call_operand.vmem [shape: f32[1,32], index: 4, kind: input, shape index: {}]   ;;  %s274_s5 = inlined_call_operand.vmem [shape: f32[1,32], index: 5, kind: input, shape index: {}]   ;;  %s275_s6 = inlined_call_operand.vmem [shape: bf16[16,32], index: 6, kind: output, shape index: {}]  }
   0x1   :  { %183 = vmatprep.subr.bf16.mxu0 %v200_v0  ;;  %v193_v1 = vld [vmem:[%s269_s1] sm:$0xff]   ;;  %187 = vmatprep.mubr.msk.bf16.mxu0 %vm201_vm0, %v200_v0  ;;  %v194_v2 = vld [vmem:[%s269_s1 + $0x8] sm:$0xff]  }
   0x2   :  { %184 = vmatpush3.bf16.msra.mxu0 %v193_v1  ;;  %v195_v3 = vld [vmem:[%s270_s0] sm:$0xff]  }
   0x3   :  { %185 = vmatprep.subr.bf16.mxu0 %v200_v0  ;;  %v177_v4 = vld [vmem:[%s271_s3] sm:$0xff]  }
   0x4   :  { %v165_v5 = vld [vmem:[%s272_s2] ss:$0 sm:$0xff]  ;;  %v178_v6 = vunpack.c.l.bf16 %v177_v4  ;;  %v179_v10 = vunpack.c.h.bf16 %v177_v4 }
   0x5   :  { %v170_v35 = vld [vmem:[%s273_s4] ss:$0 sm:$0xff] }
   0x6   :  { %186 = vmatpush3.bf16.msra.mxu0 %v194_v2  ;;  %v171_v37 = vld [vmem:[%s274_s5] ss:$0 sm:$0xff] }
   0x9   :  { %188 = vmatmul.mubr.msk.bf16.vlgmr.msra.gmra.mrb[0].mxu0 %vm54_vm1, %v195_v3 }
  0xdc   :  { %v92_v7 = vpop.f32.mrb[0].mxu0 }
  0xdd   :  { %v93_v8 = vadd.f32 %v165_v5, %v92_v7  ;;  %v189_v9 = vpop.f32.mrb[1].mxu0 }
  0xde   :  { %v95_v11 = vpop.f32.mrb[2].mxu0 }
  0xdf   :  { %v96_v12 = vadd.f32 %v165_v5, %v95_v11  ;;  %v190_v13 = vpop.f32.mrb[3].mxu0  ;;  %v103_v14 = vadd.f32 %v178_v6, %v93_v8 }
  0xe1   :  { %v105_v15 = vsel %vm54_vm1, %v103_v14, 0.0  ;;  %v104_v16 = vadd.f32 %v179_v10, %v96_v12 }
  0xe2   :  { %106 = vadd.xlane.f32.xlu0 %v105_v15 }
  0xe3   :  { %v108_v17 = vsel %vm54_vm1, %v104_v16, 0.0 }
  0xe6   :  { %109 = vadd.xlane.f32.xlu0 %v108_v17 }
 0x16f   :  { %v107_v18 = vpop.xlane.xlu0 %106 }
 0x170   :  { %v112_v19 = vmul.f32 0.03125, %v107_v18 }
 0x172   :  { %v114_v20 = vsub.f32 %v103_v14, %v112_v19 }
 0x173   :  { %v110_v21 = vpop.xlane.xlu0 %109 }
 0x174   :  { %v113_v22 = vmul.f32 0.03125, %v110_v21  ;;  %v116_v23 = vmul.f32 %v114_v20, %v114_v20 }
 0x176   :  { %v115_v24 = vsub.f32 %v104_v16, %v113_v22  ;;  %v118_v25 = vsel %vm54_vm1, %v116_v23, 0.0 }
 0x177   :  { %119 = vadd.xlane.f32.xlu1 %v118_v25 }
 0x178   :  { %v117_v26 = vmul.f32 %v115_v24, %v115_v24 }
 0x17a   :  { %v121_v27 = vsel %vm54_vm1, %v117_v26, 0.0 }
 0x17b   :  { %122 = vadd.xlane.f32.xlu1 %v121_v27 }
 0x204   :  { %v120_v28 = vpop.xlane.xlu1 %119 }
 0x205   :  { %v124_v29 = vmul.f32 0.03125, %v120_v28 }
 0x207   :  { %v126_v30 = vadd.f32 1e-12, %v124_v29 }
 0x208   :  { %v123_v31 = vpop.xlane.xlu1 %122 }
 0x209   :  { %196 = vrsqrt.f32 %v126_v30  ;;  %v125_v32 = vmul.f32 0.03125, %v123_v31 }
 0x20b   :  { %v127_v33 = vadd.f32 1e-12, %v125_v32 }
 0x20d   :  { %198 = vrsqrt.f32 %v127_v33 }
 0x213   :  { %v197_v34 = vpop.eup %196 }
 0x214   :  { %v130_v36 = vmul.f32 %v197_v34, %v114_v20 }
 0x216   :  { %v139_v38 = vmul.f32 %v170_v35, %v130_v36 }
 0x217   :  { %v199_v39 = vpop.eup %198 }
 0x218   :  { %v148_v40 = vadd.f32 %v171_v37, %v139_v38  ;;  %v131_v41 = vmul.f32 %v199_v39, %v115_v24 }
 0x21a   :  { %v174_v42 = vpack.c.bf16 %v148_v40, %v148_v40  ;;  %v140_v43 = vmul.f32 %v170_v35, %v131_v41 }
 0x21c   :  { %159 = vst.msk [vmem:[%s275_s6] sm:$0xf] %vm158_vm2, %v174_v42  ;;  %v149_v44 = vadd.f32 %v171_v37, %v140_v43 }
 0x21e   :  { %v175_v45 = vpack.c.bf16 %v149_v44, %v149_v44 }
 0x220   :  { %160 = vst.msk [vmem:[%s275_s6 + $0x4] sm:$0xf] %vm158_vm2, %v175_v45 }

// kernel: bert_forward.12
= control target key start
LH: loop header
LB: loop body
LE: loop exit
PB: predicated region body
PF: predicated region fallthrough
CT: control target
= control target key end

     0   :  { %s496_s18 = smov 0   ;;  %s498_s19 = smov 0   ;;  %s544_s0 = inlined_call_operand.vmem [shape: bf16[2,8,32], index: 0, kind: input, shape index: {}]   ;;  %s545_s1 = inlined_call_operand.vmem [shape: bf16[1,8,32], index: 1, kind: input, shape index: {}]   ;;  %s546_s2 = inlined_call_operand.vmem [shape: bf16[1,1,32], index: 2, kind: input, shape index: {}]   ;;  %s547_s3 = inlined_call_operand.vmem [shape: f32[1,32], index: 3, kind: input, shape index: {}]   ;;  %s548_s4 = inlined_call_operand.vmem [shape: f32[1,32], index: 4, kind: input, shape index: {}]   ;;  %s549_s5 = inlined_call_operand.vmem [shape: bf16[2,8,32], index: 5, kind: output, shape index: {}]  }
   0x1   :  { %s500_s20 = smov 0  }
   0x2 LB: > { %s27_s21 = sadd.s32 1, %s460_s19  ;;  %p409_p0 = scmp.ge.s32.totalorder %s464_s20, 1  ;;  %s464_s20 = sphi %s500_s20, %s15_s20   ;;  %s460_s19 = sphi %s498_s19, %s551_s19   ;;  %s456_s18 = sphi %s496_s18, %s550_s18  }
   0x3   : > { %p29_p1 = scmp.ge.s32.totalorder %s27_s21, 2  ;;  %p214_p2 = scmp.lt.s32.totalorder %s464_s20, 3 }
   0x5   : > { %s553_s21 = smov (%p29_p1, %s27_s21), 0  ;;  %p215_p3 = pnand %p409_p0, %p214_p2 }
   0x6   : > { %p250_p4 = scmp.lt.s32.totalorder (!%p215_p3), %s456_s18, 1  ;;  %v273_v0 = vld [vmem:[%s546_s2] sm:$0x1] (!%p215_p3)  ;;  %v275_v1 = vlaneseq (!%p215_p3)  ;;  %vm280_vm0 = vcmask (!%p215_p3), 261120   ;;  %vm312_vm1 = vcmask (!%p215_p3), 257024  }
   0x7   : > { %218 = sbr.rel (%p215_p3) target bundleno = 340 (0x154), region = 40  ;;  %v270_v2 = vld [vmem:[%s545_s1] sm:$0xf] (!%p215_p3)  ;;  %v274_v4 = vunpack.c.l.bf16 (!%p215_p3), %v273_v0 }
   0x8   : > { %v276_v3 = vshrl.u32 (!%p215_p3), %v275_v1, 7  ;;  %v271_v6 = vunpack.c.l.bf16 (!%p215_p3), %v270_v2  ;;  %v412_v22 = vld [vmem:[%s547_s3] ss:$0 sm:$0xff] (!%p215_p3) }
   0x9   : > { %v413_v24 = vld [vmem:[%s548_s4] ss:$0 sm:$0xff] (!%p215_p3) }
   0xa   : > { %v277_v5 = vsub.s32 (!%p215_p3), 0, %v276_v3 }
   0xc   : > { %v278_v9 = vrot.slane (!%p215_p3), %v274_v4, %v277_v5 }
   0xe   : > { %s555_s18 = smov (!%p250_p4, %s456_s18), 1 }
   0xf   : > { %s410_s26 = sshll.u32 %s555_s18, 2 }
  0x10   : > { %s256_s29 = scalar_lea.vmem %s544_s0, %s410_s26  ;;  %s267_s11 = scalar_lea.vmem %s549_s5, %s410_s26 }
  0x11   : > { %v268_v7 = vld [vmem:[%s256_s29] sm:$0xf] }
  0x12   : > { %v269_v8 = vunpack.c.l.bf16 %v268_v7 }
  0x14   : > { %v272_v10 = vadd.f32 %v271_v6, %v269_v8 }
  0x16   : > { %v279_v11 = vadd.f32 %v278_v9, %v272_v10 }
  0x18   : > { %v281_v12 = vsel %vm280_vm0, %v279_v11, 0.0 }
  0x19   : > { %282 = vadd.xlane.f32.xlu0 %v281_v12 }
  0xa6   : > { %v283_v13 = vpop.xlane.xlu0 %282 }
  0xa7   : > { %v285_v14 = vmul.f32 0.03125, %v283_v13 }
  0xa9   : > { %v286_v15 = vsub.f32 %v279_v11, %v285_v14 }
  0xab   : > { %v287_v16 = vmul.f32 %v286_v15, %v286_v15 }
  0xad   : > { %v288_v17 = vsel %vm280_vm0, %v287_v16, 0.0 }
  0xae   : > { %289 = vadd.xlane.f32.xlu0 %v288_v17 }
 0x13b   : > { %v290_v18 = vpop.xlane.xlu0 %289 }
 0x13c   : > { %v291_v19 = vmul.f32 0.03125, %v290_v18 }
 0x13e   : > { %v292_v20 = vadd.f32 1e-12, %v291_v19 }
 0x140   : > { %440 = vrsqrt.f32 %v292_v20 }
 0x14a   : > { %v441_v21 = vpop.eup %440 }
 0x14b   : > { %v294_v23 = vmul.f32 %v441_v21, %v286_v15 }
 0x14d   : > { %v302_v25 = vmul.f32 %v412_v22, %v294_v23 }
 0x14f   : > { %v310_v26 = vadd.f32 %v413_v24, %v302_v25 }
 0x151   : > { %v311_v27 = vpack.c.bf16 %v310_v26, %v310_v26 }
 0x153   : > { %313 = vst.msk [vmem:[%s267_s11] sm:$0xf] %vm312_vm1, %v311_v27 }
 0x154 PF: > { %s15_s20 = sadd.s32 1, %s464_s20   ;;  %s550_s18 = smov %s460_s19 }
 0x155   : > { %p12_p5 = scmp.ge.s32.totalorder %s15_s20, 4   ;;  %s551_s19 = smov %s553_s21 }
 0x157   :  { %14 = sbr.rel (!%p12_p5) target bundleno = 2 (0x2), region = 73 }

// kernel: bert_forward.14
= control target key start
LH: loop header
LB: loop body
LE: loop exit
PB: predicated region body
PF: predicated region fallthrough
CT: control target
= control target key end

     0   :  { %s642_s9 = smov 0   ;;  %s644_s10 = smov 0   ;;  %s703_s0 = inlined_call_operand.vmem [shape: bf16[2,8,96], index: 0, kind: input, shape index: {}]   ;;  %s704_s1 = inlined_call_operand.vmem [shape: f32[2,1,8], index: 1, kind: input, shape index: {}]   ;;  %s705_s2 = inlined_call_operand.vmem [shape: bf16[2,8,32], index: 2, kind: output, shape index: {}]  }
   0x1   :  { %s646_s11 = smov 0  }
   0x2 LB: > { %s24_s12 = sadd.s32 1, %s613_s10  ;;  %p509_p0 = scmp.ge.s32.totalorder %s617_s11, 1  ;;  %s617_s11 = sphi %s646_s11, %s12_s11   ;;  %s613_s10 = sphi %s644_s10, %s707_s10   ;;  %s609_s9 = sphi %s642_s9, %s706_s9  }
   0x3   : > { %p26_p1 = scmp.ge.s32.totalorder %s24_s12, 2  ;;  %p133_p2 = scmp.lt.s32.totalorder %s617_s11, 3 }
   0x5   : > { %s709_s12 = smov (%p26_p1, %s24_s12), 0  ;;  %p134_p3 = pnand %p509_p0, %p133_p2 }
   0x6   : > { %p159_p4 = scmp.lt.s32.totalorder (!%p134_p3), %s609_s9, 1  ;;  %v619_v0 = vmov (!%p134_p3), 0.0   ;;  %vm620_vm0 = vmmov (!%p134_p3), 0   ;;  %s621_s17 = smov (!%p134_p3), 96   ;;  %vm193_vm1 = vcmask (!%p134_p3), 130048   ;;  %vm240_vm2 = vcmask (!%p134_p3), 64512  }
   0x7   : > { %137 = sbr.rel (%p134_p3) target bundleno = 1230 (0x4ce), region = 28  ;;  %529 = vmatprep.subr.bf16.mxu0 (!%p134_p3), %v619_v0  ;;  %531 = vmatprep.mubr.msk.bf16.mxu0 (!%p134_p3), %vm620_vm0, %v619_v0  ;;  %s622_s18 = smov (!%p134_p3), 64   ;;  %vm256_vm3 = vcmask (!%p134_p3), 1043456   ;;  %vm421_vm4 = vcmask (!%p134_p3), 257024  }
   0x8   : > { %535 = vmatprep.subr.bf16.mxu1 (!%p134_p3), %v619_v0  ;;  %537 = vmatprep.mubr.msk.bf16.mxu1 (!%p134_p3), %vm620_vm0, %v619_v0  ;;  %s623_s19 = smov (!%p134_p3), 80   ;;  %s624_s20 = smov (!%p134_p3), 112  }
   0x9   : > { %s625_s24 = smov (!%p134_p3), 48   ;;  %s626_s25 = smov (!%p134_p3), 16  }
   0xe   : > { %s711_s9 = smov (!%p159_p4, %s609_s9), 1 }
   0xf   : > { %s510_s13 = sshll.u32 %s711_s9, 2  ;;  %s165_s23 = scalar_lea.vmem %s704_s1, %s711_s9 }
  0x10   : > { %s162_s16 = scalar_lea.vmem %s703_s0, %s510_s13  ;;  %v512_v6 = vld [vmem:[%s165_s23] ss:$0 sm:$0xff]  ;;  %s172_s28 = scalar_lea.vmem %s705_s2, %s510_s13 }
  0x11   : > { %v585_v1 = vld [vmem:[%s162_s16] ss:$0 sps:$4 sm:$0xff]  }
  0x12   : > { %191 = vrot.lane.b32.xlu0 %v585_v1, %s621_s17  ;;  %v180_v4 = vld [vmem:[%s162_s16] sm:$0xf]  ;;  %251 = vrot.lane.b32.xlu1 %v585_v1, %s622_s18 }
  0x13   : > { %v516_v5 = vcombine.low %v180_v4, %v180_v4 }
  0x16   : > { %307 = vrot.lane.b32.xlu1 %v585_v1, %s623_s19 }
  0x1a   : > { %305 = vrot.lane.b32.xlu1 %v516_v5, %s624_s20 }
  0x84   : > { %v192_v2 = vpop.permute.xlu0 %191  ;;  %v252_v13 = vpop.permute.xlu1 %251 }
  0x85   : > { %v198_v3 = vsel %vm193_vm1, %v192_v2, 0  ;;  %v258_v14 = vsel %vm256_vm3, %v252_v13, 0 }
  0x86   : > { %530 = vmatpush3.bf16.xpose.msra.mxu0 %v198_v3  ;;  %536 = vmatpush3.bf16.msra.mxu1 %v258_v14 }
  0x87   : > { %547 = vmatprep.subr.bf16.mxu0 %v619_v0  ;;  %541 = vmatprep.subr.bf16.mxu1 %v619_v0 }
  0x88   : > { %v308_v18 = vpop.permute.xlu1 %307 }
  0x89   : > { %v313_v20 = vsel %vm193_vm1, %v308_v18, 0 }
  0x8c   : > { %v306_v22 = vpop.permute.xlu1 %305 }
  0x8d   : > { %532 = vmatmul.mubr.msk.bf16.vlgmr.msra.gmra.mrb[0].mxu0 %vm193_vm1, %v180_v4 }
  0x8e   : > { %549 = vmatprep.mubr.msk.bf16.mxu0 %vm620_vm0, %v619_v0 }
 0x160   : > { %v234_v7 = vpop.f32.mrb[0].mxu0 }
 0x161   : > { %v235_v8 = vadd.f32 %v512_v6, %v234_v7  ;;  %v533_v9 = vpop.f32.mrb[1].mxu0 }
 0x162   : > { %v237_v10 = vpop.f32.mrb[2].mxu0 }
 0x163   : > { %v534_v11 = vpop.f32.mrb[3].mxu0  ;;  %v241_v12 = vsel %vm240_vm2, %v235_v8, -inf }
 0x164   : > { %242 = vmax.xlane.f32.xlu0 %v241_v12 }
 0x17a   : > { %365 = vrot.lane.b32.xlu0 %v585_v1, %s625_s24 }
 0x1f1   : > { %v243_v15 = vpop.xlane.xlu0 %242 }
 0x1f2   : > { %v244_v16 = vsub.f32 %v235_v8, %v243_v15 }
 0x1f4   : > { %v245_v17 = vmul.f32 1.442695, %v244_v16 }
 0x1f5   : > { %v366_v33 = vpop.permute.xlu0 %365 }
 0x1f6   : > { %587 = vpow2.f32 %v245_v17  ;;  %v371_v34 = vsel %vm256_vm3, %v366_v33, 0 }
 0x1f7   : > { %548 = vmatpush3.bf16.msra.mxu0 %v371_v34 }
 0x200   : > { %v588_v19 = vpop.eup %587 }
 0x201   : > { %v250_v21 = vpack.c.bf16 %v588_v19, %v588_v19  ;;  %v247_v41 = vsel %vm240_vm2, %v588_v19, 0.0 }
 0x203   : > { %538 = vmatmul.mubr.msk.bf16.vlgmr.msra.gmra.mrb[0].mxu1 %vm240_vm2, %v250_v21 }
 0x204   : > { %542 = vmatpush3.bf16.xpose.msra.mxu1 %v313_v20  ;;  %543 = vmatprep.mubr.msk.bf16.mxu1 %vm620_vm0, %v619_v0 }
 0x20b   : > { %544 = vmatmul.mubr.msk.bf16.vlgmr.msra.gmra.mrb[4].mxu1 %vm193_vm1, %v306_v22 }
 0x2d6   : > { %v294_v23 = vpop.f32.mrb[0].mxu1 }
 0x2d7   : > { %v539_v24 = vpop.f32.mrb[1].mxu1 }
 0x2d8   : > { %v297_v25 = vpop.f32.mrb[2].mxu1 }
 0x2d9   : > { %v540_v26 = vpop.f32.mrb[3].mxu1 }
 0x2de   : > { %v349_v27 = vpop.f32.mrb[4].mxu1 }
 0x2df   : > { %v350_v28 = vadd.f32 %v512_v6, %v349_v27  ;;  %v545_v29 = vpop.f32.mrb[5].mxu1 }
 0x2e0   : > { %v352_v30 = vpop.f32.mrb[6].mxu1 }
 0x2e1   : > { %v546_v31 = vpop.f32.mrb[7].mxu1  ;;  %v355_v32 = vsel %vm240_vm2, %v350_v28, -inf }
 0x2e2   : > { %356 = vmax.xlane.f32.xlu1 %v355_v32 }
 0x36f   : > { %v357_v35 = vpop.xlane.xlu1 %356 }
 0x370   : > { %v358_v36 = vsub.f32 %v350_v28, %v357_v35 }
 0x372   : > { %v359_v37 = vmul.f32 1.442695, %v358_v36 }
 0x374   : > { %589 = vpow2.f32 %v359_v37 }
 0x37e   : > { %v590_v38 = vpop.eup %589 }
 0x37f   : > { %v361_v39 = vsel %vm240_vm2, %v590_v38, 0.0  ;;  %v364_v40 = vpack.c.bf16 %v590_v38, %v590_v38 }
 0x380   : > { %362 = vadd.xlane.f32.xlu1 %v361_v39 }
 0x381   : > { %550 = vmatmul.mubr.msk.bf16.vlgmr.msra.gmra.mrb[4].mxu0 %vm240_vm2, %v364_v40 }
 0x384   : > { %248 = vadd.xlane.f32.xlu1 %v247_v41 }
 0x40d   : > { %v363_v42 = vpop.xlane.xlu1 %362 }
 0x40e   : > { %591 = vrcp.f32 %v363_v42 }
 0x411   : > { %v249_v49 = vpop.xlane.xlu1 %248 }
 0x412   : > { %593 = vrcp.f32 %v249_v49 }
 0x418   : > { %v592_v43 = vpop.eup %591 }
 0x41c   : > { %v594_v50 = vpop.eup %593 }
 0x41d   : > { %v301_v51 = vmul.f32 %v594_v50, %v294_v23 }
 0x454   : > { %v407_v44 = vpop.f32.mrb[4].mxu0 }
 0x455   : > { %v414_v45 = vmul.f32 %v592_v43, %v407_v44  ;;  %v551_v46 = vpop.f32.mrb[5].mxu0 }
 0x456   : > { %v410_v47 = vpop.f32.mrb[6].mxu0 }
 0x457   : > { %416 = vrot.lane.b32.xlu1 %v414_v45, %s626_s25  ;;  %v552_v48 = vpop.f32.mrb[7].mxu0 }
 0x4c9   : > { %v417_v52 = vpop.permute.xlu1 %416 }
 0x4ca   : > { %v419_v53 = vsel %vm193_vm1, %v301_v51, %v417_v52 }
 0x4cb   : > { %v420_v54 = vpack.c.bf16 %v419_v53, %v419_v53 }
 0x4cd   : > { %422 = vst.msk [vmem:[%s172_s28] sm:$0xf] %vm421_vm4, %v420_v54 }
 0x4ce PF: > { %s12_s11 = sadd.s32 1, %s617_s11   ;;  %s706_s9 = smov %s613_s10 }
 0x4cf   : > { %p9_p5 = scmp.ge.s32.totalorder %s12_s11, 4   ;;  %s707_s10 = smov %s709_s12 }
 0x4d1   :  { %11 = sbr.rel (!%p9_p5) target bundleno = 2 (0x2), region = 62 }

// kernel: bert_forward.16
= control target key start
LH: loop header
LB: loop body
LE: loop exit
PB: predicated region body
PF: predicated region fallthrough
CT: control target
= control target key end

     0   :  { %v156_v0 = vmov 0.0   ;;  %vm157_vm0 = vmmov 0   ;;  %vm45_vm1 = vcmask 261120   ;;  %s193_s1 = inlined_call_operand.vmem [shape: bf16[32,128], index: 1, kind: input, shape index: {}]   ;;  %s194_s0 = inlined_call_operand.vmem [shape: bf16[16,32], index: 0, kind: input, shape index: {}]   ;;  %s195_s2 = inlined_call_operand.vmem [shape: f32[1,128], index: 2, kind: input, shape index: {}]   ;;  %s196_s3 = inlined_call_operand.vmem [shape: bf16[16,128], index: 3, kind: output, shape index: {}]  }
   0x1   :  { %139 = vmatprep.subr.bf16.mxu0 %v156_v0  ;;  %v149_v1 = vld [vmem:[%s193_s1] sm:$0xff]   ;;  %143 = vmatprep.mubr.msk.bf16.mxu0 %vm157_vm0, %v156_v0  ;;  %v150_v2 = vld [vmem:[%s193_s1 + $0x8] sm:$0xff]  }
   0x2   :  { %140 = vmatpush3.bf16.msra.mxu0 %v149_v1  ;;  %v151_v3 = vld [vmem:[%s194_s0] sm:$0xff]  }
   0x3   :  { %141 = vmatprep.subr.bf16.mxu0 %v156_v0  ;;  %v122_v4 = vld [vmem:[%s195_s2] ss:$0 sm:$0xff] }
   0x6   :  { %142 = vmatpush3.bf16.msra.mxu0 %v150_v2 }
   0x9   :  { %144 = vmatmul.mubr.msk.bf16.vlgmr.msra.gmra.mrb[0].mxu0 %vm45_vm1, %v151_v3 }
  0xdc   :  { %v83_v5 = vpop.f32.mrb[0].mxu0 }
  0xdd   :  { %v84_v6 = vadd.f32 %v122_v4, %v83_v5  ;;  %v145_v7 = vpop.f32.mrb[1].mxu0 }
  0xde   :  { %v86_v8 = vpop.f32.mrb[2].mxu0 }
  0xdf   :  { %v92_v9 = vmul.f32 0.044715, %v84_v6  ;;  %v87_v10 = vadd.f32 %v122_v4, %v86_v8  ;;  %v146_v11 = vpop.f32.mrb[3].mxu0  ;;  %v90_v24 = vmul.f32 0.5, %v84_v6 }
  0xe1   :  { %v94_v12 = vmul.f32 %v92_v9, %v84_v6  ;;  %v93_v13 = vmul.f32 0.044715, %v87_v10  ;;  %v91_v25 = vmul.f32 0.5, %v87_v10 }
  0xe3   :  { %v96_v14 = vmul.f32 %v94_v12, %v84_v6  ;;  %v95_v15 = vmul.f32 %v93_v13, %v87_v10 }
  0xe5   :  { %v98_v16 = vadd.f32 %v96_v14, %v84_v6  ;;  %v97_v17 = vmul.f32 %v95_v15, %v87_v10 }
  0xe7   :  { %v100_v18 = vmul.f32 0.7978846, %v98_v16  ;;  %v99_v19 = vadd.f32 %v97_v17, %v87_v10 }
  0xe9   :  { %152 = vtanh.f32 %v100_v18  ;;  %v101_v20 = vmul.f32 0.7978846, %v99_v19 }
  0xeb   :  { %154 = vtanh.f32 %v101_v20 }
  0xf3   :  { %v153_v21 = vpop.eup %152 }
  0xf4   :  { %v104_v22 = vadd.f32 1.0, %v153_v21 }
  0xf5   :  { %v155_v23 = vpop.eup %154 }
  0xf6   :  { %v105_v26 = vadd.f32 1.0, %v155_v23  ;;  %v106_v27 = vmul.f32 %v104_v22, %v90_v24 }
  0xf8   :  { %v107_v28 = vmul.f32 %v105_v26, %v91_v25 }
  0xfa   :  { %v134_v29 = vpack.c.bf16 %v107_v28, %v106_v27 }
  0xfc   :  { %135 = vst [vmem:[%s196_s3] sm:$0xff] %v134_v29  }

// kernel: bert_forward.17
= control target key start
LH: loop header
LB: loop body
LE: loop exit
PB: predicated region body
PF: predicated region fallthrough
CT: control target
= control target key end

     0   :  { %v275_v0 = vmov 0.0   ;;  %vm276_vm0 = vmmov 0   ;;  %vm150_vm1 = vcmask 261120   ;;  %vm204_vm2 = vcmask 257024   ;;  %s361_s1 = inlined_call_operand.vmem [shape: bf16[128,32], index: 1, kind: input, shape index: {}]   ;;  %s362_s0 = inlined_call_operand.vmem [shape: bf16[16,128], index: 0, kind: input, shape index: {}]   ;;  %s363_s3 = inlined_call_operand.vmem [shape: bf16[16,32], index: 3, kind: input, shape index: {}]   ;;  %s364_s2 = inlined_call_operand.vmem [shape: f32[1,32], index: 2, kind: input, shape index: {}]   ;;  %s365_s4 = inlined_call_operand.vmem [shape: f32[1,32], index: 4, kind: input, shape index: {}]   ;;  %s366_s5 = inlined_call_operand.vmem [shape: f32[1,32], index: 5, kind: input, shape index: {}]   ;;  %s367_s6 = inlined_call_operand.vmem [shape: bf16[16,32], index: 6, kind: output, shape index: {}]  }
   0x1   :  { %240 = vmatprep.subr.bf16.mxu0 %v275_v0  ;;  %v262_v1 = vld [vmem:[%s361_s1] sm:$0xff]   ;;  %256 = vmatprep.mubr.msk.bf16.mxu0 %vm276_vm0, %v275_v0  ;;  %v263_v2 = vld [vmem:[%s361_s1 + $0x8] sm:$0xff]   ;;  %v264_v3 = vld [vmem:[%s361_s1 + $0x10] sm:$0xff]  }
   0x2   :  { %241 = vmatpush3.bf16.msra.mxu0 %v262_v1  ;;  %v265_v4 = vld [vmem:[%s361_s1 + $0x18] sm:$0xff]   ;;  %v266_v5 = vld [vmem:[%s361_s1 + $0x20] sm:$0xff]   ;;  %v267_v6 = vld [vmem:[%s361_s1 + $0x28] sm:$0xff]  }
   0x3   :  { %242 = vmatprep.subr.bf16.mxu0 %v275_v0  ;;  %v268_v7 = vld [vmem:[%s361_s1 + $0x30] sm:$0xff]   ;;  %v269_v8 = vld [vmem:[%s361_s1 + $0x38] sm:$0xff]   ;;  %v270_v9 = vld [vmem:[%s362_s0] sm:$0xff]  }
   0x4   :  { %v228_v10 = vld [vmem:[%s363_s3] sm:$0xff]  }
   0x5   :  { %v211_v11 = vld [vmem:[%s364_s2] ss:$0 sm:$0xff]  ;;  %v229_v12 = vunpack.c.l.bf16 %v228_v10  ;;  %v230_v16 = vunpack.c.h.bf16 %v228_v10 }
   0x6   :  { %243 = vmatpush3.bf16.msra.mxu0 %v263_v2  ;;  %v221_v41 = vld [vmem:[%s365_s4] ss:$0 sm:$0xff] }
   0x7   :  { %244 = vmatprep.subr.bf16.mxu0 %v275_v0  ;;  %v222_v43 = vld [vmem:[%s366_s5] ss:$0 sm:$0xff] }
   0xa   :  { %245 = vmatpush3.bf16.msra.mxu0 %v264_v3 }
   0xb   :  { %246 = vmatprep.subr.bf16.mxu0 %v275_v0 }
   0xe   :  { %247 = vmatpush3.bf16.msra.mxu0 %v265_v4 }
   0xf   :  { %248 = vmatprep.subr.bf16.mxu0 %v275_v0 }
  0x12   :  { %249 = vmatpush3.bf16.msra.mxu0 %v266_v5 }
  0x13   :  { %250 = vmatprep.subr.bf16.mxu0 %v275_v0 }
  0x16   :  { %251 = vmatpush3.bf16.msra.mxu0 %v267_v6 }
  0x17   :  { %252 = vmatprep.subr.bf16.mxu0 %v275_v0 }
  0x1a   :  { %253 = vmatpush3.bf16.msra.mxu0 %v268_v7 }
  0x1b   :  { %254 = vmatprep.subr.bf16.mxu0 %v275_v0 }
  0x1e   :  { %255 = vmatpush3.bf16.msra.mxu0 %v269_v8 }
  0x21   :  { %257 = vmatmul.mubr.bf16.vlgmr.msra.gmra.mrb[0].mxu0 %v270_v9 }
  0xf4   :  { %v137_v13 = vpop.f32.mrb[0].mxu0 }
  0xf5   :  { %v138_v14 = vadd.f32 %v211_v11, %v137_v13  ;;  %v258_v15 = vpop.f32.mrb[1].mxu0 }
  0xf6   :  { %v140_v17 = vpop.f32.mrb[2].mxu0 }
  0xf7   :  { %v141_v18 = vadd.f32 %v211_v11, %v140_v17  ;;  %v259_v19 = vpop.f32.mrb[3].mxu0  ;;  %v148_v20 = vadd.f32 %v229_v12, %v138_v14 }
  0xf9   :  { %v151_v21 = vsel %vm150_vm1, %v148_v20, 0.0  ;;  %v149_v22 = vadd.f32 %v230_v16, %v141_v18 }
  0xfa   :  { %152 = vadd.xlane.f32.xlu0 %v151_v21 }
  0xfb   :  { %v154_v23 = vsel %vm150_vm1, %v149_v22, 0.0 }
  0xfe   :  { %155 = vadd.xlane.f32.xlu0 %v154_v23 }
 0x187   :  { %v153_v24 = vpop.xlane.xlu0 %152 }
 0x188   :  { %v158_v25 = vmul.f32 0.03125, %v153_v24 }
 0x18a   :  { %v160_v26 = vsub.f32 %v148_v20, %v158_v25 }
 0x18b   :  { %v156_v27 = vpop.xlane.xlu0 %155 }
 0x18c   :  { %v159_v28 = vmul.f32 0.03125, %v156_v27  ;;  %v162_v29 = vmul.f32 %v160_v26, %v160_v26 }
 0x18e   :  { %v161_v30 = vsub.f32 %v149_v22, %v159_v28  ;;  %v164_v31 = vsel %vm150_vm1, %v162_v29, 0.0 }
 0x18f   :  { %165 = vadd.xlane.f32.xlu1 %v164_v31 }
 0x190   :  { %v163_v32 = vmul.f32 %v161_v30, %v161_v30 }
 0x192   :  { %v167_v33 = vsel %vm150_vm1, %v163_v32, 0.0 }
 0x193   :  { %168 = vadd.xlane.f32.xlu1 %v167_v33 }
 0x21c   :  { %v166_v34 = vpop.xlane.xlu1 %165 }
 0x21d   :  { %v170_v35 = vmul.f32 0.03125, %v166_v34 }
 0x21f   :  { %v172_v36 = vadd.f32 1e-12, %v170_v35 }
 0x220   :  { %v169_v37 = vpop.xlane.xlu1 %168 }
 0x221   :  { %271 = vrsqrt.f32 %v172_v36  ;;  %v171_v38 = vmul.f32 0.03125, %v169_v37 }
 0x223   :  { %v173_v39 = vadd.f32 1e-12, %v171_v38 }
 0x225   :  { %273 = vrsqrt.f32 %v173_v39 }
 0x22b   :  { %v272_v40 = vpop.eup %271 }
 0x22c   :  { %v176_v42 = vmul.f32 %v272_v40, %v160_v26 }
 0x22e   :  { %v185_v44 = vmul.f32 %v221_v41, %v176_v42 }
 0x22f   :  { %v274_v45 = vpop.eup %273 }
 0x230   :  { %v194_v46 = vadd.f32 %v222_v43, %v185_v44  ;;  %v177_v47 = vmul.f32 %v274_v45, %v161_v30 }
 0x232   :  { %v225_v48 = vpack.c.bf16 %v194_v46, %v194_v46  ;;  %v186_v49 = vmul.f32 %v221_v41, %v177_v47 }
 0x234   :  { %205 = vst.msk [vmem:[%s367_s6] sm:$0xf] %vm204_vm2, %v225_v48  ;;  %v195_v50 = vadd.f32 %v222_v43, %v186_v49 }
 0x236   :  { %v226_v51 = vpack.c.bf16 %v195_v50, %v195_v50 }
 0x238   :  { %206 = vst.msk [vmem:[%s367_s6 + $0x4] sm:$0xf] %vm204_vm2, %v226_v51 }

// kernel: bert_forward.23
= control target key start
LH: loop header
LB: loop body
LE: loop exit
PB: predicated region body
PF: predicated region fallthrough
CT: control target
= control target key end

     0   :  { %13 = vsyncpa [#allocation3], 0  ;;  %v288_v3 = vmov 0.0   ;;  %vm289_vm0 = vmmov 0   ;;  %s398_s0 = inlined_call_operand.vmem [shape: bf16[2,32], index: 0, kind: input, shape index: {}]   ;;  %s399_s1 = inlined_call_operand.vmem [shape: f32[32,32], index: 1, kind: input, shape index: {}]   ;;  %s400_s2 = inlined_call_operand.vmem [shape: f32[1,32], index: 2, kind: input, shape index: {}]   ;;  %s401_s3 = inlined_call_operand.vmem [shape: f32[32,10], index: 3, kind: input, shape index: {}]   ;;  %s402_s4 = inlined_call_operand.vmem [shape: f32[1,10], index: 4, kind: input, shape index: {}]   ;;  %s403_s5 = inlined_call_operand.vmem [shape: f32[2,10], index: 5, kind: input, shape index: {}]   ;;  %s404_s6 = inlined_call_operand.hbm [shape: f32[2,10], index: 6, kind: output, shape index: {0}]   ;;  %s405_s7 = inlined_call_operand.hbm [shape: f32[1,1], index: 7, kind: output, shape index: {1}]  }
   0x1   :  { %v29_v0 = vld [vmem:[%s399_s1] sm:$0xff]  ;;  %v30_v1 = vld [vmem:[%s399_s1 + $0x8] sm:$0xff]  ;;  %v31_v2 = vld [vmem:[%s399_s1 + $0x10] sm:$0xff]  ;;  %214 = vmatprep.subr.bf16.mxu0 %v288_v3  ;;  %218 = vmatprep.mubr.msk.bf16.mxu0 %vm289_vm0, %v288_v3 }
   0x2   :  { %v33_v4 = vpack.c.bf16 %v30_v1, %v29_v0  ;;  %v32_v5 = vld [vmem:[%s399_s1 + $0x18] sm:$0xff]  ;;  %222 = vmatprep.subr.bf16.mxu1 %v288_v3  ;;  %226 = vmatprep.mubr.msk.bf16.mxu1 %vm289_vm0, %v288_v3 }
   0x3   :  { %14 = vsyncpa [#allocation5], 0  ;;  %v34_v6 = vpack.c.bf16 %v32_v5, %v31_v2  ;;  %v28_v7 = vld [vmem:[%s398_s0] sm:$0x1]  ;;  %vm42_vm1 = vcmask 261120   ;;  %v89_v9 = vld [vmem:[%s401_s3 + $0x8] sm:$0xff] }
   0x4   :  { %215 = vmatpush3.bf16.msra.mxu0 %v33_v4  ;;  %v88_v8 = vld [vmem:[%s401_s3] sm:$0xff]  ;;  %v90_v11 = vld [vmem:[%s401_s3 + $0x10] sm:$0xff]  ;;  %v91_v12 = vld [vmem:[%s401_s3 + $0x18] sm:$0xff]  ;;  %vm144_vm2 = vcmask 74752  }
   0x5   :  { %216 = vmatprep.subr.bf16.mxu0 %v288_v3  ;;  %v92_v10 = vpack.c.bf16 %v89_v9, %v88_v8  ;;  %v93_v13 = vpack.c.bf16 %v91_v12, %v90_v11  ;;  %v204_v14 = vld [vmem:[%s400_s2] ss:$0 sm:$0xff]  ;;  %s290_s2 = smov [#allocation2]  }
   0x6   :  { %v206_v22 = vld [vmem:[%s402_s4] ss:$0 sm:$0xff]  ;;  %s182_s4 = sshll.u32 %s290_s2, 4  ;;  %s183_s4 = int_to_ptr.vmem [resolvable:$true] %s182_s4 }
   0x7   :  { %223 = vmatpush3.bf16.msra.mxu1 %v92_v10  ;;  %v158_v24 = vld [vmem:[%s403_s5] sm:$0x3]  ;;  %s240_s5 = scalar_lea.vmem %s183_s4, 32  ;;  %p245_p1 = scmp.lt.s32.totalorder %s183_s4, %s183_s4 }
   0x8   :  { %217 = vmatpush3.bf16.msra.mxu0 %v34_v6  ;;  %224 = vmatprep.subr.bf16.mxu1 %v288_v3  ;;  %p241_p0 = scmp.ne.s32.totalorder %s183_s4, %s240_s5  ;;  %p246_p2 = scmp.lt.s32.totalorder %s240_s5, %s240_s5 }
   0xa   :  { %p247_p3 = por %p246_p2, %p245_p1 }
   0xb   :  { %219 = vmatmul.mubr.msk.bf16.vlgmr.msra.gmra.mrb[0].mxu0 %vm42_vm1, %v28_v7  ;;  %225 = vmatpush3.bf16.msra.mxu1 %v93_v13 }
   0xc   :  { %p248_p4 = pnand %p247_p3, %p241_p0 }
  0xde   :  { %v80_v15 = vpop.f32.mrb[0].mxu0 }
  0xdf   :  { %v81_v16 = vadd.f32 %v204_v14, %v80_v15  ;;  %v220_v17 = vpop.f32.mrb[1].mxu0 }
  0xe0   :  { %v83_v18 = vpop.f32.mrb[2].mxu0 }
  0xe1   :  { %234 = vtanh.f32 %v81_v16  ;;  %v221_v19 = vpop.f32.mrb[3].mxu0 }
  0xeb   :  { %v235_v20 = vpop.eup %234 }
  0xec   :  { %v87_v21 = vpack.c.bf16 %v235_v20, %v235_v20 }
  0xee   :  { %227 = vmatmul.mubr.msk.bf16.vlgmr.msra.gmra.mrb[0].mxu1 %vm42_vm1, %v87_v21 }
 0x1c1   :  { %v138_v23 = vpop.f32.mrb[0].mxu1 }
 0x1c2   :  { %v139_v25 = vadd.f32 %v206_v22, %v138_v23  ;;  %v228_v26 = vpop.f32.mrb[1].mxu1 }
 0x1c3   :  { %v141_v27 = vpop.f32.mrb[2].mxu1 }
 0x1c4   :  { %v229_v28 = vpop.f32.mrb[3].mxu1  ;;  %v146_v29 = vsel %vm144_vm2, %v139_v25, -inf  ;;  %145 = vst.msk [vmem:[#allocation2] sm:$0x3] %vm144_vm2, %v139_v25  ;;  %v159_v30 = vmul.f32 %v158_v24, %v139_v25 }
 0x1c5   :  { %147 = vmax.xlane.f32.xlu0 %v146_v29 }
 0x1c6   :  { %v160_v31 = vsel %vm144_vm2, %v159_v30, 0.0 }
 0x1c7   :  { %161 = vadd.xlane.f32.xlu1 %v160_v31 }
 0x252   :  { %v148_v32 = vpop.xlane.xlu0 %147 }
 0x253   :  { %v149_v33 = vsub.f32 %v139_v25, %v148_v32 }
 0x255   :  { %v150_v34 = vmul.f32 1.442695, %v149_v33 }
 0x257   :  { %236 = vpow2.f32 %v150_v34 }
 0x261   :  { %v237_v35 = vpop.eup %236 }
 0x262   :  { %v152_v36 = vsel %vm144_vm2, %v237_v35, 0.0 }
 0x263   :  { %153 = vadd.xlane.f32.xlu0 %v152_v36 }
 0x264   :  { %251 = shalt.err (!%p248_p4)
}
 0x265   :  { %s252_s24 = scalar_lea.hbm %s404_s6, 32 }
 0x266   :  { %p253_p5 = scmp.ne.s32.totalorder %s404_s6, %s252_s24  ;;  %p256_p6 = scmp.lt.u32.totalorder %s252_s24, %s404_s6 }
 0x268   :  { %p258_p7 = pnand %p256_p6, %p253_p5 }
 0x26a   :  { %261 = shalt.err (!%p258_p7)
}
 0x26b   :  { %185 = dma.vmem_to_hbm [thread:$0]  %s183_s4, 32, %s404_s6, [#allocation3]   ;;  %v162_v41 = vpop.xlane.xlu1 %161  ;;  %vm164_vm3 = vcmask 1041408   ;;  %vm174_vm4 = vcmask 0  }
 0x26c   :  { %s291_s8 = smov [#allocation4]  }
 0x26d   :  { %s192_s9 = sshll.u32 %s291_s8, 4  ;;  %s193_s9 = int_to_ptr.vmem [resolvable:$true] %s192_s9 }
 0x26e   :  { %s262_s6 = scalar_lea.vmem %s193_s9, 16  ;;  %s266_s10 = scalar_lea.vmem %s193_s9, 32 }
 0x26f   :  { %p263_p8 = scmp.ne.s32.totalorder %s193_s9, %s262_s6  ;;  %p267_p9 = scmp.lt.s32.totalorder %s193_s9, %s193_s9 }
 0x270   :  { %p268_p10 = scmp.lt.s32.totalorder %s266_s10, %s262_s6 }
 0x272   :  { %p269_p11 = por %p268_p10, %p267_p9 }
 0x274   :  { %p270_p12 = pnand %p269_p11, %p263_p8 }
 0x2f0   :  { %v154_v37 = vpop.xlane.xlu0 %153 }
 0x2f1   :  { %238 = vlog2.f32 %v154_v37 }
 0x2fb   :  { %v239_v38 = vpop.eup %238 }
 0x2fc   :  { %v156_v39 = vmul.f32 0.6931472, %v239_v38 }
 0x2fe   :  { %v157_v40 = vadd.f32 %v156_v39, %v148_v32 }
 0x300   :  { %v163_v42 = vsub.f32 %v157_v40, %v162_v41 }
 0x302   :  { %v165_v43 = vsel %vm164_vm3, %v163_v42, 0.0 }
 0x303   :  { %v166_v44 = vrot.slane %v165_v43, 4 }
 0x305   :  { %v167_v45 = vadd.f32 %v166_v44, %v165_v43 }
 0x307   :  { %v168_v46 = vrot.slane %v167_v45, 2 }
 0x309   :  { %v169_v47 = vadd.f32 %v168_v46, %v167_v45 }
 0x30b   :  { %v170_v48 = vrot.slane %v169_v47, 1 }
 0x30d   :  { %v171_v49 = vadd.f32 %v170_v48, %v169_v47 }
 0x30f   :  { %v173_v50 = vmul.f32 0.5, %v171_v49 }
 0x311   :  { %175 = vst.msk [vmem:[#allocation4] sm:$0x1] %vm174_vm4, %v173_v50 }
 0x312   :  { %273 = shalt.err (!%p270_p12)
}
 0x313   :  { %s274_s1 = scalar_lea.hbm %s405_s7, 16 }
 0x314   :  { %p275_p13 = scmp.ne.s32.totalorder %s405_s7, %s274_s1  ;;  %p278_p0 = scmp.lt.u32.totalorder %s274_s1, %s405_s7 }
 0x316   :  { %p280_p1 = pnand %p278_p0, %p275_p13 }
 0x318   :  { %283 = shalt.err (!%p280_p1)
}
 0x319   :  { %195 = dma.vmem_to_hbm [thread:$0]  %s193_s9, 16, %s405_s7, [#allocation5]  }
 0x31a   :  { %284 = dma.done.wait [#allocation3], 32  }
 0x31b   :  { %285 = vsyncadd [#allocation3], 4294967264 }
 0x31c   :  { %286 = dma.done.wait [#allocation5], 16  }
 0x31d   :  { %287 = vsyncadd [#allocation5], 4294967280 }
 0x31e   :  { %202 = vsyncpa [#allocation3], 1 }
 0x31f   :  { %203 = vsyncpa [#allocation5], 1 }

</bundles_post_ra>
